<compile_context>
chip_gen: v5e
topology: v5e:2x2
jax: 0.10.0
libtpu: 0.0.40
codegen_flags: <defaults>
</compile_context>

<pallas_src>
import functools

import jax
import jax.numpy as jnp
from jax.experimental import pallas as pl
from jax.experimental.pallas import tpu as pltpu


def mhsa_kernel(x_ref, wqt_ref, bq_ref, wkt_ref, bk_ref, wvt_ref, bv_ref,
                wpt_ref, bp_ref, o_ref, *, num_heads):
    # x_ref:   (bs, hw, c)        bf16 activation block (bs batch elements)
    # w{q,k,v}t_ref: (c, c)       bf16, (in, out) layout; scale folded into wqt
    # b{q,k,v}_ref:  (1, c)       f32 biases (scale folded into bq)
    # wpt_ref: (c, out_dim)       bf16 projection weight, (in, out) layout
    # bp_ref:  (1, out_dim)       f32 projection bias
    # o_ref:   (bs, hw, out_dim)  output block
    bs, hw, c = x_ref.shape
    d = c // num_heads
    out_dim = o_ref.shape[-1]

    x2 = x_ref[...].reshape(bs * hw, c)                        # bf16 (bs*hw, c)

    def fused_linear(wt_ref, b_ref):
        y = jnp.dot(x2, wt_ref[...], preferred_element_type=jnp.float32)
        return y + b_ref[...]                                  # f32 (bs*hw, c)

    q = fused_linear(wqt_ref, bq_ref).astype(jnp.bfloat16)     # scale pre-folded
    k = fused_linear(wkt_ref, bk_ref).astype(jnp.bfloat16)
    v = fused_linear(wvt_ref, bv_ref).astype(jnp.bfloat16)

    batch_ctx = []
    for b in range(bs):                                        # small, unrolled
        head_ctx = []
        for h in range(num_heads):                             # small, unrolled
            qh = q[b * hw:(b + 1) * hw, h * d:(h + 1) * d]     # (hw, d) bf16
            kh = k[b * hw:(b + 1) * hw, h * d:(h + 1) * d]
            vh = v[b * hw:(b + 1) * hw, h * d:(h + 1) * d]
            # scores = qh @ kh.T  (scale already folded into qh)
            s = jax.lax.dot_general(
                qh, kh, dimension_numbers=(((1,), (1,)), ((), ())),
                preferred_element_type=jnp.float32)            # (hw, hw) f32
            s = s - jnp.max(s, axis=-1, keepdims=True)
            e = jnp.exp(s)
            p = e * pl.reciprocal(jnp.sum(e, axis=-1, keepdims=True), approx=True)
            # TODO(synk): nn.Dropout(p=dropratio) is identity in eval mode; not applied.
            ctx_h = jnp.dot(p.astype(jnp.bfloat16), vh,
                            preferred_element_type=jnp.float32)  # (hw, d) f32
            head_ctx.append(ctx_h.astype(jnp.bfloat16))
        batch_ctx.append(jnp.concatenate(head_ctx, axis=1))    # (hw, c) bf16
    ctx = jnp.concatenate(batch_ctx, axis=0)                   # (bs*hw, c) bf16

    out = jnp.dot(ctx, wpt_ref[...], preferred_element_type=jnp.float32) + bp_ref[...]
    o_ref[...] = out.reshape(bs, hw, out_dim).astype(o_ref.dtype)


def mhsa_forward(x, wq, bq, wk, bk, wv, bv, wp, bp, num_heads, block_b=None):
    """x: (B, HW, C); w*: PyTorch nn.Linear weights (out, in); b*: (out,)."""
    B, HW, C = x.shape
    out_dim = wp.shape[0]
    d = C // num_heads
    scale = float(d) ** -0.5

    if block_b is None:
        # Keep >= 2 grid steps when B >= 2 (feeds both v7x TensorCores / pipelines the
        # x DMA); cap the block so VMEM stays trivial.
        block_b = 1 if B <= 1 else max(1, min(B // 2, 8))
    assert B % block_b == 0, "batch must divide block_b"

    # One-time weight prep (hoist / precompute in a real model):
    #   transpose to (in, out) layout, fold 1/sqrt(d) into Wq & bq, cast weights to bf16.
    wqt = (wq * scale).T.astype(jnp.bfloat16)                  # (C, C)
    wkt = wk.T.astype(jnp.bfloat16)
    wvt = wv.T.astype(jnp.bfloat16)
    wpt = wp.T.astype(jnp.bfloat16)                            # (C, out_dim)
    bq2 = (bq * scale).reshape(1, C).astype(jnp.float32)
    bk2 = bk.reshape(1, C).astype(jnp.float32)
    bv2 = bv.reshape(1, C).astype(jnp.float32)
    bp2 = bp.reshape(1, out_dim).astype(jnp.float32)
    x_bf = x.astype(jnp.bfloat16)

    x_spec = pl.BlockSpec((block_b, HW, C), lambda b: (b, 0, 0))
    w_spec = pl.BlockSpec((C, C), lambda b: (0, 0))            # constant -> resident
    bqkv_spec = pl.BlockSpec((1, C), lambda b: (0, 0))
    wpt_spec = pl.BlockSpec((C, out_dim), lambda b: (0, 0))
    bp_spec = pl.BlockSpec((1, out_dim), lambda b: (0, 0))
    out_spec = pl.BlockSpec((block_b, HW, out_dim), lambda b: (b, 0, 0))

    kernel = functools.partial(mhsa_kernel, num_heads=num_heads)

    return pl.pallas_call(
        kernel,
        out_shape=jax.ShapeDtypeStruct((B, HW, out_dim), x.dtype),
        grid=(B // block_b,),
        in_specs=[x_spec,
                  w_spec, bqkv_spec,     # query
                  w_spec, bqkv_spec,     # key
                  w_spec, bqkv_spec,     # value
                  wpt_spec, bp_spec],    # output projection
        out_specs=out_spec,
        compiler_params=pltpu.CompilerParams(
            dimension_semantics=("parallel",)),
    )(x_bf, wqt, bq2, wkt, bk2, wvt, bv2, wpt, bp2)


def mhsa_reference(x, wq, bq, wk, bk, wv, bv, wp, bp, num_heads):
    """Pure-JAX f32 reference matching the PyTorch MHSA forward (eval mode)."""
    b, hw, c = x.shape
    d = c // num_heads
    scale = float(d) ** -0.5

    def split(t):
        return t.reshape(b, hw, num_heads, d).transpose(0, 2, 1, 3)

    q = split(x @ wq.T + bq)
    k = split(x @ wk.T + bk)
    v = split(x @ wv.T + bv)
    s = jnp.einsum('bhqd,bhkd->bhqk', q, k) * scale
    p = jax.nn.softmax(s, axis=-1)
    dot = jnp.einsum('bhqk,bhkd->bhqd', p, v)
    dot = dot.transpose(0, 2, 1, 3).reshape(b, hw, c)
    return dot @ wp.T + bp


if __name__ == "__main__":
    # MHSA(inc=128, groups=4, dropratio=0.1)  ->  dim_1h = 32, out_dim = 128
    B, HW, C = 2, 64, 128
    GROUPS = 4
    OUT_DIM = C  # ouc=None -> out_dim = inc

    key = jax.random.PRNGKey(0)
    ks = jax.random.split(key, 9)
    x = jax.random.normal(ks[0], (B, HW, C), dtype=jnp.float32)
    wq = 0.1 * jax.random.normal(ks[1], (C, C), dtype=jnp.float32)
    bq = 0.1 * jax.random.normal(ks[2], (C,), dtype=jnp.float32)
    wk = 0.1 * jax.random.normal(ks[3], (C, C), dtype=jnp.float32)
    bk = 0.1 * jax.random.normal(ks[4], (C,), dtype=jnp.float32)
    wv = 0.1 * jax.random.normal(ks[5], (C, C), dtype=jnp.float32)
    bv = 0.1 * jax.random.normal(ks[6], (C,), dtype=jnp.float32)
    wp = 0.1 * jax.random.normal(ks[7], (OUT_DIM, C), dtype=jnp.float32)
    bp = 0.1 * jax.random.normal(ks[8], (OUT_DIM,), dtype=jnp.float32)

    out = mhsa_forward(x, wq, bq, wk, bk, wv, bv, wp, bp, GROUPS)
    out = jax.block_until_ready(out)

    ref = mhsa_reference(x, wq, bq, wk, bk, wv, bv, wp, bp, GROUPS)
    assert out.shape == (B, HW, OUT_DIM)
    # bf16 MXU operands (f32 accumulation) -> ~1e-2 relative error vs the f32 reference.
    assert jnp.allclose(out, ref, atol=5e-2, rtol=5e-2), (
        "mismatch vs reference, max abs diff = %f" % float(jnp.max(jnp.abs(out - ref))))

    print("KERNEL_OK")
</pallas_src>

<mosaic_0001>
module attributes {stable_mosaic.version = 11 : i64} {
  func.func @mhsa_kernel(%arg0: i32, %arg1: memref<1x64x128xbf16, #tpu.memory_space<vmem>>, %arg2: memref<128x128xbf16, #tpu.memory_space<vmem>>, %arg3: memref<1x128xf32, #tpu.memory_space<vmem>>, %arg4: memref<128x128xbf16, #tpu.memory_space<vmem>>, %arg5: memref<1x128xf32, #tpu.memory_space<vmem>>, %arg6: memref<128x128xbf16, #tpu.memory_space<vmem>>, %arg7: memref<1x128xf32, #tpu.memory_space<vmem>>, %arg8: memref<128x128xbf16, #tpu.memory_space<vmem>>, %arg9: memref<1x128xf32, #tpu.memory_space<vmem>>, %arg10: memref<1x64x128xf32, #tpu.memory_space<vmem>>) attributes {dimension_semantics = [#tpu.dimension_semantics<parallel>], iteration_bounds = array<i64: 2>, scalar_prefetch = 0 : i64, scratch_operands = 0 : i64, tpu.core_type = #tpu.core_type<tc>, window_params = [{transform_indices = @transform_0, window_bounds = array<i64: 1, 64, 128>}, {pipeline_mode = #tpu.pipeline_mode<synchronous>, transform_indices = @transform_1, window_bounds = array<i64: 128, 128>}, {pipeline_mode = #tpu.pipeline_mode<synchronous>, transform_indices = @transform_2, window_bounds = array<i64: 1, 128>}, {pipeline_mode = #tpu.pipeline_mode<synchronous>, transform_indices = @transform_3, window_bounds = array<i64: 128, 128>}, {pipeline_mode = #tpu.pipeline_mode<synchronous>, transform_indices = @transform_4, window_bounds = array<i64: 1, 128>}, {pipeline_mode = #tpu.pipeline_mode<synchronous>, transform_indices = @transform_5, window_bounds = array<i64: 128, 128>}, {pipeline_mode = #tpu.pipeline_mode<synchronous>, transform_indices = @transform_6, window_bounds = array<i64: 1, 128>}, {pipeline_mode = #tpu.pipeline_mode<synchronous>, transform_indices = @transform_7, window_bounds = array<i64: 128, 128>}, {pipeline_mode = #tpu.pipeline_mode<synchronous>, transform_indices = @transform_8, window_bounds = array<i64: 1, 128>}, {transform_indices = @transform_9, window_bounds = array<i64: 1, 64, 128>}]} {
    %c0 = arith.constant 0 : index
    %c0_0 = arith.constant 0 : index
    %c0_1 = arith.constant 0 : index
    %0 = vector.load %arg1[%c0, %c0_0, %c0_1] : memref<1x64x128xbf16, #tpu.memory_space<vmem>>, vector<1x64x128xbf16>
    %1 = vector.shape_cast %0 : vector<1x64x128xbf16> to vector<64x128xbf16>
    %c0_2 = arith.constant 0 : index
    %c0_3 = arith.constant 0 : index
    %2 = vector.load %arg2[%c0_2, %c0_3] : memref<128x128xbf16, #tpu.memory_space<vmem>>, vector<128x128xbf16>
    %cst = arith.constant dense<0.000000e+00> : vector<64x128xf32>
    %3 = tpu.matmul %1, %2, %cst {dimension_numbers = #tpu.dot_dimension_numbers<[1], [0], [0], [1], [0, 0, 1, 1], [], []>} : vector<64x128xbf16>, vector<128x128xbf16>, vector<64x128xf32> -> vector<64x128xf32>
    %c0_4 = arith.constant 0 : index
    %c0_5 = arith.constant 0 : index
    %4 = vector.load %arg3[%c0_4, %c0_5] : memref<1x128xf32, #tpu.memory_space<vmem>>, vector<1x128xf32>
    %5 = vector.broadcast %4 : vector<1x128xf32> to vector<64x128xf32>
    %6 = arith.addf %3, %5 : vector<64x128xf32>
    %7 = arith.truncf %6 : vector<64x128xf32> to vector<64x128xbf16>
    %c0_6 = arith.constant 0 : index
    %c0_7 = arith.constant 0 : index
    %8 = vector.load %arg4[%c0_6, %c0_7] : memref<128x128xbf16, #tpu.memory_space<vmem>>, vector<128x128xbf16>
    %cst_8 = arith.constant dense<0.000000e+00> : vector<64x128xf32>
    %9 = tpu.matmul %1, %8, %cst_8 {dimension_numbers = #tpu.dot_dimension_numbers<[1], [0], [0], [1], [0, 0, 1, 1], [], []>} : vector<64x128xbf16>, vector<128x128xbf16>, vector<64x128xf32> -> vector<64x128xf32>
    %c0_9 = arith.constant 0 : index
    %c0_10 = arith.constant 0 : index
    %10 = vector.load %arg5[%c0_9, %c0_10] : memref<1x128xf32, #tpu.memory_space<vmem>>, vector<1x128xf32>
    %11 = vector.broadcast %10 : vector<1x128xf32> to vector<64x128xf32>
    %12 = arith.addf %9, %11 : vector<64x128xf32>
    %13 = arith.truncf %12 : vector<64x128xf32> to vector<64x128xbf16>
    %c0_11 = arith.constant 0 : index
    %c0_12 = arith.constant 0 : index
    %14 = vector.load %arg6[%c0_11, %c0_12] : memref<128x128xbf16, #tpu.memory_space<vmem>>, vector<128x128xbf16>
    %cst_13 = arith.constant dense<0.000000e+00> : vector<64x128xf32>
    %15 = tpu.matmul %1, %14, %cst_13 {dimension_numbers = #tpu.dot_dimension_numbers<[1], [0], [0], [1], [0, 0, 1, 1], [], []>} : vector<64x128xbf16>, vector<128x128xbf16>, vector<64x128xf32> -> vector<64x128xf32>
    %c0_14 = arith.constant 0 : index
    %c0_15 = arith.constant 0 : index
    %16 = vector.load %arg7[%c0_14, %c0_15] : memref<1x128xf32, #tpu.memory_space<vmem>>, vector<1x128xf32>
    %17 = vector.broadcast %16 : vector<1x128xf32> to vector<64x128xf32>
    %18 = arith.addf %15, %17 : vector<64x128xf32>
    %19 = arith.truncf %18 : vector<64x128xf32> to vector<64x128xbf16>
    %20 = vector.extract_strided_slice %7 {offsets = [0, 0], sizes = [64, 32], strides = [1, 1]} : vector<64x128xbf16> to vector<64x32xbf16>
    %21 = vector.extract_strided_slice %13 {offsets = [0, 0], sizes = [64, 32], strides = [1, 1]} : vector<64x128xbf16> to vector<64x32xbf16>
    %22 = vector.extract_strided_slice %19 {offsets = [0, 0], sizes = [64, 32], strides = [1, 1]} : vector<64x128xbf16> to vector<64x32xbf16>
    %cst_16 = arith.constant dense<0.000000e+00> : vector<64x64xf32>
    %23 = tpu.matmul %20, %21, %cst_16 {dimension_numbers = #tpu.dot_dimension_numbers<[1], [1], [0], [0], [0, 0, 1, 0], [], []>} : vector<64x32xbf16>, vector<64x32xbf16>, vector<64x64xf32> -> vector<64x64xf32>
    %cst_17 = arith.constant dense<0xFF800000> : vector<64xf32>
    %24 = vector.multi_reduction <maximumf>, %23, %cst_17 [1] : vector<64x64xf32> to vector<64xf32>
    %25 = vector.shape_cast %24 : vector<64xf32> to vector<64x1xf32>
    %26 = vector.broadcast %25 : vector<64x1xf32> to vector<64x64xf32>
    %27 = arith.subf %23, %26 : vector<64x64xf32>
    %28 = math.exp %27 : vector<64x64xf32>
    %cst_18 = arith.constant dense<0.000000e+00> : vector<64xf32>
    %29 = vector.multi_reduction <add>, %28, %cst_18 [1] : vector<64x64xf32> to vector<64xf32>
    %30 = vector.shape_cast %29 : vector<64xf32> to vector<64x1xf32>
    %31 = tpu.reciprocal %30 {approx = true} : vector<64x1xf32> -> vector<64x1xf32>
    %32 = vector.broadcast %31 : vector<64x1xf32> to vector<64x64xf32>
    %33 = arith.mulf %28, %32 : vector<64x64xf32>
    %34 = arith.truncf %33 : vector<64x64xf32> to vector<64x64xbf16>
    %cst_19 = arith.constant dense<0.000000e+00> : vector<64x32xf32>
    %35 = tpu.matmul %34, %22, %cst_19 {dimension_numbers = #tpu.dot_dimension_numbers<[1], [0], [0], [1], [0, 0, 1, 1], [], []>} : vector<64x64xbf16>, vector<64x32xbf16>, vector<64x32xf32> -> vector<64x32xf32>
    %36 = arith.truncf %35 : vector<64x32xf32> to vector<64x32xbf16>
    %37 = vector.extract_strided_slice %7 {offsets = [0, 32], sizes = [64, 32], strides = [1, 1]} : vector<64x128xbf16> to vector<64x32xbf16>
    %38 = vector.extract_strided_slice %13 {offsets = [0, 32], sizes = [64, 32], strides = [1, 1]} : vector<64x128xbf16> to vector<64x32xbf16>
    %39 = vector.extract_strided_slice %19 {offsets = [0, 32], sizes = [64, 32], strides = [1, 1]} : vector<64x128xbf16> to vector<64x32xbf16>
    %cst_20 = arith.constant dense<0.000000e+00> : vector<64x64xf32>
    %40 = tpu.matmul %37, %38, %cst_20 {dimension_numbers = #tpu.dot_dimension_numbers<[1], [1], [0], [0], [0, 0, 1, 0], [], []>} : vector<64x32xbf16>, vector<64x32xbf16>, vector<64x64xf32> -> vector<64x64xf32>
    %cst_21 = arith.constant dense<0xFF800000> : vector<64xf32>
    %41 = vector.multi_reduction <maximumf>, %40, %cst_21 [1] : vector<64x64xf32> to vector<64xf32>
    %42 = vector.shape_cast %41 : vector<64xf32> to vector<64x1xf32>
    %43 = vector.broadcast %42 : vector<64x1xf32> to vector<64x64xf32>
    %44 = arith.subf %40, %43 : vector<64x64xf32>
    %45 = math.exp %44 : vector<64x64xf32>
    %cst_22 = arith.constant dense<0.000000e+00> : vector<64xf32>
    %46 = vector.multi_reduction <add>, %45, %cst_22 [1] : vector<64x64xf32> to vector<64xf32>
    %47 = vector.shape_cast %46 : vector<64xf32> to vector<64x1xf32>
    %48 = tpu.reciprocal %47 {approx = true} : vector<64x1xf32> -> vector<64x1xf32>
    %49 = vector.broadcast %48 : vector<64x1xf32> to vector<64x64xf32>
    %50 = arith.mulf %45, %49 : vector<64x64xf32>
    %51 = arith.truncf %50 : vector<64x64xf32> to vector<64x64xbf16>
    %cst_23 = arith.constant dense<0.000000e+00> : vector<64x32xf32>
    %52 = tpu.matmul %51, %39, %cst_23 {dimension_numbers = #tpu.dot_dimension_numbers<[1], [0], [0], [1], [0, 0, 1, 1], [], []>} : vector<64x64xbf16>, vector<64x32xbf16>, vector<64x32xf32> -> vector<64x32xf32>
    %53 = arith.truncf %52 : vector<64x32xf32> to vector<64x32xbf16>
    %54 = vector.extract_strided_slice %7 {offsets = [0, 64], sizes = [64, 32], strides = [1, 1]} : vector<64x128xbf16> to vector<64x32xbf16>
    %55 = vector.extract_strided_slice %13 {offsets = [0, 64], sizes = [64, 32], strides = [1, 1]} : vector<64x128xbf16> to vector<64x32xbf16>
    %56 = vector.extract_strided_slice %19 {offsets = [0, 64], sizes = [64, 32], strides = [1, 1]} : vector<64x128xbf16> to vector<64x32xbf16>
    %cst_24 = arith.constant dense<0.000000e+00> : vector<64x64xf32>
    %57 = tpu.matmul %54, %55, %cst_24 {dimension_numbers = #tpu.dot_dimension_numbers<[1], [1], [0], [0], [0, 0, 1, 0], [], []>} : vector<64x32xbf16>, vector<64x32xbf16>, vector<64x64xf32> -> vector<64x64xf32>
    %cst_25 = arith.constant dense<0xFF800000> : vector<64xf32>
    %58 = vector.multi_reduction <maximumf>, %57, %cst_25 [1] : vector<64x64xf32> to vector<64xf32>
    %59 = vector.shape_cast %58 : vector<64xf32> to vector<64x1xf32>
    %60 = vector.broadcast %59 : vector<64x1xf32> to vector<64x64xf32>
    %61 = arith.subf %57, %60 : vector<64x64xf32>
    %62 = math.exp %61 : vector<64x64xf32>
    %cst_26 = arith.constant dense<0.000000e+00> : vector<64xf32>
    %63 = vector.multi_reduction <add>, %62, %cst_26 [1] : vector<64x64xf32> to vector<64xf32>
    %64 = vector.shape_cast %63 : vector<64xf32> to vector<64x1xf32>
    %65 = tpu.reciprocal %64 {approx = true} : vector<64x1xf32> -> vector<64x1xf32>
    %66 = vector.broadcast %65 : vector<64x1xf32> to vector<64x64xf32>
    %67 = arith.mulf %62, %66 : vector<64x64xf32>
    %68 = arith.truncf %67 : vector<64x64xf32> to vector<64x64xbf16>
    %cst_27 = arith.constant dense<0.000000e+00> : vector<64x32xf32>
    %69 = tpu.matmul %68, %56, %cst_27 {dimension_numbers = #tpu.dot_dimension_numbers<[1], [0], [0], [1], [0, 0, 1, 1], [], []>} : vector<64x64xbf16>, vector<64x32xbf16>, vector<64x32xf32> -> vector<64x32xf32>
    %70 = arith.truncf %69 : vector<64x32xf32> to vector<64x32xbf16>
    %71 = vector.extract_strided_slice %7 {offsets = [0, 96], sizes = [64, 32], strides = [1, 1]} : vector<64x128xbf16> to vector<64x32xbf16>
    %72 = vector.extract_strided_slice %13 {offsets = [0, 96], sizes = [64, 32], strides = [1, 1]} : vector<64x128xbf16> to vector<64x32xbf16>
    %73 = vector.extract_strided_slice %19 {offsets = [0, 96], sizes = [64, 32], strides = [1, 1]} : vector<64x128xbf16> to vector<64x32xbf16>
    %cst_28 = arith.constant dense<0.000000e+00> : vector<64x64xf32>
    %74 = tpu.matmul %71, %72, %cst_28 {dimension_numbers = #tpu.dot_dimension_numbers<[1], [1], [0], [0], [0, 0, 1, 0], [], []>} : vector<64x32xbf16>, vector<64x32xbf16>, vector<64x64xf32> -> vector<64x64xf32>
    %cst_29 = arith.constant dense<0xFF800000> : vector<64xf32>
    %75 = vector.multi_reduction <maximumf>, %74, %cst_29 [1] : vector<64x64xf32> to vector<64xf32>
    %76 = vector.shape_cast %75 : vector<64xf32> to vector<64x1xf32>
    %77 = vector.broadcast %76 : vector<64x1xf32> to vector<64x64xf32>
    %78 = arith.subf %74, %77 : vector<64x64xf32>
    %79 = math.exp %78 : vector<64x64xf32>
    %cst_30 = arith.constant dense<0.000000e+00> : vector<64xf32>
    %80 = vector.multi_reduction <add>, %79, %cst_30 [1] : vector<64x64xf32> to vector<64xf32>
    %81 = vector.shape_cast %80 : vector<64xf32> to vector<64x1xf32>
    %82 = tpu.reciprocal %81 {approx = true} : vector<64x1xf32> -> vector<64x1xf32>
    %83 = vector.broadcast %82 : vector<64x1xf32> to vector<64x64xf32>
    %84 = arith.mulf %79, %83 : vector<64x64xf32>
    %85 = arith.truncf %84 : vector<64x64xf32> to vector<64x64xbf16>
    %cst_31 = arith.constant dense<0.000000e+00> : vector<64x32xf32>
    %86 = tpu.matmul %85, %73, %cst_31 {dimension_numbers = #tpu.dot_dimension_numbers<[1], [0], [0], [1], [0, 0, 1, 1], [], []>} : vector<64x64xbf16>, vector<64x32xbf16>, vector<64x32xf32> -> vector<64x32xf32>
    %87 = arith.truncf %86 : vector<64x32xf32> to vector<64x32xbf16>
    %88 = tpu.concatenate %36, %53, %70, %87 in 1 : vector<64x32xbf16>, vector<64x32xbf16>, vector<64x32xbf16>, vector<64x32xbf16> -> vector<64x128xbf16>
    %c0_32 = arith.constant 0 : index
    %c0_33 = arith.constant 0 : index
    %89 = vector.load %arg8[%c0_32, %c0_33] : memref<128x128xbf16, #tpu.memory_space<vmem>>, vector<128x128xbf16>
    %cst_34 = arith.constant dense<0.000000e+00> : vector<64x128xf32>
    %90 = tpu.matmul %88, %89, %cst_34 {dimension_numbers = #tpu.dot_dimension_numbers<[1], [0], [0], [1], [0, 0, 1, 1], [], []>} : vector<64x128xbf16>, vector<128x128xbf16>, vector<64x128xf32> -> vector<64x128xf32>
    %c0_35 = arith.constant 0 : index
    %c0_36 = arith.constant 0 : index
    %91 = vector.load %arg9[%c0_35, %c0_36] : memref<1x128xf32, #tpu.memory_space<vmem>>, vector<1x128xf32>
    %92 = vector.broadcast %91 : vector<1x128xf32> to vector<64x128xf32>
    %93 = arith.addf %90, %92 : vector<64x128xf32>
    %94 = vector.shape_cast %93 : vector<64x128xf32> to vector<1x64x128xf32>
    %c0_37 = arith.constant 0 : index
    %c0_38 = arith.constant 0 : index
    %c0_39 = arith.constant 0 : index
    %95 = vector.load %arg10[%c0_37, %c0_38, %c0_39] : memref<1x64x128xf32, #tpu.memory_space<vmem>>, vector<1x64x128xf32>
    tpu.vector_store %arg10[%c0_37, %c0_38, %c0_39], %94 {strides = array<i32>} : memref<1x64x128xf32, #tpu.memory_space<vmem>>, vector<1x64x128xf32>,
    return
  }
  func.func @transform_0(%arg0: i32) -> (i32, i32, i32) {
    %c0_i32 = arith.constant 0 : i32
    %c0_i32_0 = arith.constant 0 : i32
    %c0_i32_1 = arith.constant 0 : i32
    return %arg0, %c0_i32, %c0_i32_0 : i32, i32, i32
  }
  func.func @transform_1(%arg0: i32) -> (i32, i32) {
    %c0_i32 = arith.constant 0 : i32
    %c0_i32_0 = arith.constant 0 : i32
    %c0_i32_1 = arith.constant 0 : i32
    return %c0_i32, %c0_i32_0 : i32, i32
  }
  func.func @transform_2(%arg0: i32) -> (i32, i32) {
    %c0_i32 = arith.constant 0 : i32
    %c0_i32_0 = arith.constant 0 : i32
    %c0_i32_1 = arith.constant 0 : i32
    return %c0_i32, %c0_i32_0 : i32, i32
  }
  func.func @transform_3(%arg0: i32) -> (i32, i32) {
    %c0_i32 = arith.constant 0 : i32
    %c0_i32_0 = arith.constant 0 : i32
    %c0_i32_1 = arith.constant 0 : i32
    return %c0_i32, %c0_i32_0 : i32, i32
  }
  func.func @transform_4(%arg0: i32) -> (i32, i32) {
    %c0_i32 = arith.constant 0 : i32
    %c0_i32_0 = arith.constant 0 : i32
    %c0_i32_1 = arith.constant 0 : i32
    return %c0_i32, %c0_i32_0 : i32, i32
  }
  func.func @transform_5(%arg0: i32) -> (i32, i32) {
    %c0_i32 = arith.constant 0 : i32
    %c0_i32_0 = arith.constant 0 : i32
    %c0_i32_1 = arith.constant 0 : i32
    return %c0_i32, %c0_i32_0 : i32, i32
  }
  func.func @transform_6(%arg0: i32) -> (i32, i32) {
    %c0_i32 = arith.constant 0 : i32
    %c0_i32_0 = arith.constant 0 : i32
    %c0_i32_1 = arith.constant 0 : i32
    return %c0_i32, %c0_i32_0 : i32, i32
  }
  func.func @transform_7(%arg0: i32) -> (i32, i32) {
    %c0_i32 = arith.constant 0 : i32
    %c0_i32_0 = arith.constant 0 : i32
    %c0_i32_1 = arith.constant 0 : i32
    return %c0_i32, %c0_i32_0 : i32, i32
  }
  func.func @transform_8(%arg0: i32) -> (i32, i32) {
    %c0_i32 = arith.constant 0 : i32
    %c0_i32_0 = arith.constant 0 : i32
    %c0_i32_1 = arith.constant 0 : i32
    return %c0_i32, %c0_i32_0 : i32, i32
  }
  func.func @transform_9(%arg0: i32) -> (i32, i32, i32) {
    %c0_i32 = arith.constant 0 : i32
    %c0_i32_0 = arith.constant 0 : i32
    %c0_i32_1 = arith.constant 0 : i32
    return %arg0, %c0_i32, %c0_i32_0 : i32, i32, i32
  }
}

</mosaic_0001>

<bundles_post_ra>
// kernel: tpu_custom_call.1
= control target key start
LH: loop header
LB: loop body
LE: loop exit
PB: predicated region body
PF: predicated region fallthrough
CT: control target
= control target key end

     0   :  { %s3572_s0 = inlined_call_operand.hbm [shape: bf16[2,64,128], index: 0, kind: input, shape index: {}]   ;;  %s3573_s1 = inlined_call_operand.hbm [shape: bf16[128,128], index: 1, kind: input, shape index: {}]   ;;  %s3574_s2 = inlined_call_operand.vmem [shape: f32[1,128], index: 2, kind: input, shape index: {}]   ;;  %s3575_s3 = inlined_call_operand.hbm [shape: bf16[128,128], index: 3, kind: input, shape index: {}]   ;;  %s3576_s4 = inlined_call_operand.vmem [shape: f32[1,128], index: 4, kind: input, shape index: {}]   ;;  %s3577_s5 = inlined_call_operand.hbm [shape: bf16[128,128], index: 5, kind: input, shape index: {}]   ;;  %s3578_s6 = inlined_call_operand.vmem [shape: f32[1,128], index: 6, kind: input, shape index: {}]   ;;  %s3579_s7 = inlined_call_operand.hbm [shape: bf16[128,128], index: 7, kind: input, shape index: {}]   ;;  %s3580_s8 = inlined_call_operand.vmem [shape: f32[1,128], index: 8, kind: input, shape index: {}]   ;;  %s3581_s9 = inlined_call_operand.hbm [shape: f32[2,64,128], index: 9, kind: output, shape index: {}]  }
   0x1   :  { %3584 = sst [smem:[#allocation16_spill]] %s3573_s1 }
   0x2   :  { %3585 = sst [smem:[#allocation17_spill]] %s3575_s3 }
   0x3   :  { %3586 = sst [smem:[#allocation18_spill]] %s3577_s5 }
   0x4   :  { %14 = vsyncpa [#allocation3], 0 }
   0x5   :  { %16 = vsyncpa [#allocation3 + $0x1], 0 }
   0x6   :  { %17 = vsyncpa [#allocation6], 0 }
   0x7   :  { %18 = vsyncpa [#allocation9], 0 }
   0x8   :  { %19 = vsyncpa [#allocation4], 0 }
   0x9   :  { %21 = vsyncpa [#allocation4 + $0x1], 0  ;;  %s2811_s30 = smov 0   ;;  %s2813_s10 = smov 0  }
   0xa   :  { %s2815_s11 = smov 0   ;;  %s2817_s12 = smov 0  }
   0xb LB: > { %s2832_s13 = sadd.s32 4294967295, %s2748_s12   ;;  %s2062_s14 = sadd.s32 4294967294, %s2748_s12   ;;  %s2748_s12 = sphi %s2817_s12, %s3602_s12   ;;  %s2744_s11 = sphi %s2815_s11, %s3601_s11   ;;  %s2740_s10 = sphi %s2813_s10, %s3600_s10   ;;  %s2736_s30 = sphi %s2811_s30, %s3599_s30  }
   0xc   : > { %p47_p0 = scmp.ne.s32.totalorder %s2740_s10, %s2736_s30  ;;  %p48_p1 = scmp.eq.s32.totalorder %s2832_s13, 0 }
   0xd   : > { %p239_p2 = scmp.eq.s32.totalorder %s2832_s13, 1  ;;  %p245_p3 = scmp.eq.s32.totalorder %s2062_s14, 1 }
   0xe   : > { %p2841_p4 = por %p48_p1, %p47_p0  ;;  %p2063_p5 = scmp.ge.s32.totalorder %s2748_s12, 1 }
   0xf   : > { %p2846_p6 = por %p245_p3, %p47_p0  ;;  %p252_p7 = scmp.lt.s32.totalorder %s2748_s12, 3 }
  0x10   : > { %s3589_s1 = sld [smem:[#allocation16_spill]]  ;;  %s2750_s21 = smov [#allocation5]  }
  0x11   : > { %p2854_p8 = pnand %p2063_p5, %p252_p7  ;;  %s265_s22 = sshll.u32 %s2750_s21, 4  ;;  %s266_s22 = int_to_ptr.vmem [resolvable:$true] %s265_s22 }
  0x12   : > { %s3592_s5 = sld [smem:[#allocation18_spill]]  ;;  %s3582_s27 = smov 64  }
  0x13   : > { %p2318_p9 = pneg %p2854_p8  ;;  %s3583_s28 = smov 4  }
  0x14   : > { %s2753_s29 = smov [#allocation8]   ;;  %s3593_s3 = sld [smem:[#allocation17_spill]] }
  0x15   : > { %p2862_p10 = pnand %p2318_p9, %p48_p1  ;;  %s299_s14 = sshll.u32 %s2753_s29, 4  ;;  %s300_s14 = int_to_ptr.vmem [resolvable:$true] %s299_s14 }
  0x16   : > { %s263_s19 = sshll.u32 %s3589_s1, 4  ;;  %s314_s24 = sshll.u32 %s3579_s7, 4  ;;  %s264_s19 = int_to_ptr.hbm [resolvable:$true] %s263_s19  ;;  %s315_s24 = int_to_ptr.hbm [resolvable:$true] %s314_s24 }
  0x17   : > { %2321 = dma.hbm_to_vmem [thread:$0]  (!%p2862_p10), %s264_s19, 1024, %s266_s22, [#allocation6], %s3582_s27, %s3582_s27, %s3583_s28  }
  0x18   : > { %s297_s26 = sshll.u32 %s3592_s5, 4  ;;  %s2754_s25 = smov [#allocation7]   ;;  %s298_s26 = int_to_ptr.hbm [resolvable:$true] %s297_s26 }
  0x19   : > { %2327 = dma.hbm_to_vmem [thread:$0]  (!%p2862_p10), %s298_s26, 1024, %s300_s14, [#allocation9], %s3582_s27, %s3582_s27, %s3583_s28  }
  0x1a   : > { %s280_s21 = sshll.u32 %s3593_s3, 4  ;;  %s282_s29 = sshll.u32 %s2754_s25, 4  ;;  %s281_s21 = int_to_ptr.hbm [resolvable:$true] %s280_s21  ;;  %s283_s29 = int_to_ptr.vmem [resolvable:$true] %s282_s29 }
  0x1b   : > { %2324 = dma.hbm_to_vmem [thread:$0]  (!%p2862_p10), %s281_s21, 1024, %s283_s29, [#allocation6], %s3582_s27, %s3582_s27, %s3583_s28  }
  0x1c   : > { %s2755_s17 = smov [#allocation10]   ;;  %s2897_s14 = sadd.s32 1, %s2748_s12  }
  0x1d   : > { %s316_s26 = sshll.u32 %s2755_s17, 4  ;;  %s34_s18 = sadd.s32 1, %s2744_s11  ;;  %s317_s26 = int_to_ptr.vmem [resolvable:$true] %s316_s26 }
  0x1e   : > { %2330 = dma.hbm_to_vmem [thread:$0]  (!%p2862_p10), %s315_s24, 1024, %s317_s26, [#allocation9], %s3582_s27, %s3582_s27, %s3583_s28  }
  0x1f   : > { %s31_s19 = ssub.s32 %s2748_s12, %s2897_s14  ;;  %p41_p12 = scmp.ne.s32.totalorder %s2744_s11, %s2740_s10 }
  0x20   : > { %p32_p13 = scmp.eq.s32.totalorder %s31_s19, 0  ;;  %p42_p0 = scmp.eq.s32.totalorder %s2748_s12, 0 }
  0x21   : > { %p2907_p3 = por %p239_p2, %p41_p12  ;;  %p2343_p5 = scmp.lt.s32.totalorder %s2748_s12, 2 }
  0x22   : > { %s2913_s22 = scalar_select %p32_p13, %s2744_s11, %s34_s18  }
  0x23   : > { %p43_p7 = por %p42_p0, %p41_p12  ;;  %s333_s23 = sand.u32 1, %s2744_s11  }
  0x24   : > { %s2069_s25 = sshll.u32 %s333_s23, 5  ;;  %s2260_s24 = sshll.u32 %s2748_s12, 5 }
  0x25   : > { %s342_s26 = scalar_lea.hbm %s3572_s0, %s2260_s24  ;;  %s337_s27 = scalar_lea.vmem [#allocation2], %s2069_s25 }
  0x26   : > { %s345_s28 = sshll.u32 %s337_s27, 4  ;;  %s343_s19 = sshll.u32 %s342_s26, 4  ;;  %s346_s28 = int_to_ptr.vmem [resolvable:$true] %s345_s28  ;;  %s344_s19 = int_to_ptr.hbm [resolvable:$true] %s343_s19 }
  0x27   : > { %p2920_p2 = pnand %p2343_p5, %p43_p7  ;;  %s334_s18 = scalar_lea.sflag [#allocation3], %s333_s23 }
  0x28   : > { %s2644_s3 = sshra.s32 %s344_s19, 4  ;;  %s2651_s27 = scalar_lea.hbm %s3572_s0, 64  ;;  %s2645_s3 = int_to_ptr.hbm [resolvable:$true] %s2644_s3 }
  0x29   : > { %s2646_s5 = scalar_lea.hbm %s2645_s3, 32  ;;  %p2648_p10 = pneg %p2920_p2 }
  0x2a   : > { %p2647_p9 = scmp.ne.s32.totalorder %s2645_s3, %s2646_s5  ;;  %p2652_p0 = scmp.lt.s32.totalorder %s2645_s3, %s3572_s0 }
  0x2b   : > { %p2653_p5 = scmp.lt.s32.totalorder %s2651_s27, %s2646_s5 }
  0x2c   : > { %p2649_p12 = pnand %p2648_p10, %p2647_p9 }
  0x2d   : > { %p2654_p7 = por %p2653_p5, %p2652_p0 }
  0x2e   : > { %p2650_p13 = pneg %p2649_p12 }
  0x30   : > { %p2655_p11 = pnand %p2654_p7, %p2650_p13 }
  0x32   : > { %2658 = shalt.err (!%p2655_p11)
}
  0x33   : > { %s3596_s23 = smov 4   ;;  %s3597_s26 = smov 64  }
  0x34   : > { %2334 = dma.hbm_to_vmem [thread:$0]  (!%p2920_p2), %s344_s19, 512, %s346_s28, %s334_s18, %s3597_s26, %s3597_s26, %s3596_s23  }
  0x35   : > { %357 = sbr.rel (%p2854_p8) target bundleno = 1479 (0x5c7), region = 56  ;;  %s2940_s24 = sand.u32 (!%p2854_p8), 1, %s2740_s10  }
  0x36   : > { %s2073_s3 = sshll.u32 (!%p2854_p8), %s2940_s24, 5  ;;  %s360_s5 = scalar_lea.sflag (!%p2854_p8), [#allocation3], %s2940_s24 }
  0x37   : > { %s2944_s25 = scalar_lea.vmem (!%p2854_p8), [#allocation2], %s2073_s3 }
  0x3a   : > { %2719 = dma.done.wait (%p2841_p4), %s360_s5, 512  }
  0x3b   : > { %2721 = vsyncadd (%p2841_p4), %s360_s5, 4294966784 }
  0x3c   : > { %2723 = dma.done.wait (%p48_p1), [#allocation6], 2048  }
  0x3d   : > { %2725 = vsyncadd (%p48_p1), [#allocation6], 4294965248 }
  0x3e   : > { %2727 = dma.done.wait (%p48_p1), [#allocation9], 2048  }
  0x3f   : > { %2729 = vsyncadd (%p48_p1), [#allocation9], 4294965248  ;;  %v2272_v0 = vld [vmem:[#allocation5 + $0x38] sm:$0xff]  ;;  %v2271_v2 = vld [vmem:[#allocation5 + $0x30] sm:$0xff]  ;;  %s2756_s20 = smov 96   ;;  %s2757_s18 = smov 64  }
  0x40   : > { %v2280_v1 = vld [vmem:[#allocation7 + $0x38] sm:$0xff]  ;;  %520 = vmatpush.bf16.msra.mxu0 %v2272_v0  ;;  %v2279_v3 = vld [vmem:[#allocation7 + $0x30] sm:$0xff]  ;;  %v2270_v4 = vld [vmem:[#allocation5 + $0x28] sm:$0xff]  ;;  %s2758_s27 = smov 32   ;;  %vm807_vm0 = vcmask 261120   ;;  %vm861_vm1 = vcmask 523264  }
  0x41   : > { %625 = vmatpush.bf16.msra.mxu1 %v2280_v1  ;;  %v2278_v5 = vld [vmem:[#allocation7 + $0x28] sm:$0xff]  ;;  %v2269_v6 = vld [vmem:[#allocation5 + $0x20] sm:$0xff]  ;;  %v2268_v8 = vld [vmem:[#allocation5 + $0x18] sm:$0xff]  ;;  %vm1817_vm2 = vcmask 785408   ;;  %s2078_s23 = sshll.u32 %s2940_s24, 6 }
  0x42   : > { %v2277_v7 = vld [vmem:[#allocation7 + $0x20] sm:$0xff]  ;;  %v2276_v9 = vld [vmem:[#allocation7 + $0x18] sm:$0xff]  ;;  %v2267_v10 = vld [vmem:[#allocation5 + $0x10] sm:$0xff]  ;;  %s418_s5 = scalar_lea.vmem [#allocation11], %s2078_s23  ;;  %s2694_s23 = scalar_lea.hbm %s3581_s9, 128 }
  0x43   : > { %v2275_v11 = vld [vmem:[#allocation7 + $0x10] sm:$0xff]  ;;  %v2266_v12 = vld [vmem:[#allocation5 + $0x8] sm:$0xff]  ;;  %v2288_v14 = vld [vmem:[#allocation8 + $0x38] sm:$0xff]  ;;  %s1948_s28 = sshll.u32 %s418_s5, 4  ;;  %s1949_s28 = int_to_ptr.vmem [resolvable:$true] %s1948_s28 }
  0x44   : > { %521 = vmatpush.bf16.msra.mxu0 %v2271_v2  ;;  %v2274_v13 = vld [vmem:[#allocation7 + $0x8] sm:$0xff]  ;;  %v2265_v15 = vld [vmem:[#allocation5] sm:$0xff]  ;;  %730 = vmatpush.bf16.msra.mxu2 %v2288_v14  ;;  %v2287_v18 = vld [vmem:[#allocation8 + $0x30] sm:$0xff] }
  0x45   : > { %626 = vmatpush.bf16.msra.mxu1 %v2279_v3  ;;  %v2273_v16 = vld [vmem:[#allocation7] sm:$0xff]  ;;  %v2286_v19 = vld [vmem:[#allocation8 + $0x28] sm:$0xff]  ;;  %v2284_v21 = vld [vmem:[#allocation8 + $0x18] sm:$0xff] }
  0x46   : > { %v2261_v17 = vld [vmem:[%s2944_s25] sm:$0xff]  ;;  %v2262_v22 = vld [vmem:[%s2944_s25 + $0x8] sm:$0xff]  ;;  %v2283_v23 = vld [vmem:[#allocation8 + $0x10] sm:$0xff] }
  0x47   : > { %v2285_v20 = vld [vmem:[#allocation8 + $0x20] sm:$0xff]  ;;  %v2282_v24 = vld [vmem:[#allocation8 + $0x8] sm:$0xff]  ;;  %v2263_v26 = vld [vmem:[%s2944_s25 + $0x10] sm:$0xff] }
  0x48   : > { %522 = vmatpush.bf16.msra.mxu0 %v2270_v4  ;;  %731 = vmatpush.bf16.msra.mxu2 %v2287_v18  ;;  %v2281_v25 = vld [vmem:[#allocation8] sm:$0xff]  ;;  %v2264_v27 = vld [vmem:[%s2944_s25 + $0x18] sm:$0xff]  ;;  %s2297_s25 = sshll.u32 %s2832_s13, 6 }
  0x49   : > { %627 = vmatpush.bf16.msra.mxu1 %v2278_v5  ;;  %v2965_v28 = vld [vmem:[%s3574_s2] ss:$0 sm:$0xff] }
  0x4a   : > { %v2393_v42 = vld [vmem:[%s3576_s4] ss:$0 sm:$0xff] }
  0x4c   : > { %523 = vmatpush.bf16.msra.mxu0 %v2269_v6  ;;  %732 = vmatpush.bf16.msra.mxu2 %v2286_v19 }
  0x4d   : > { %628 = vmatpush.bf16.msra.mxu1 %v2277_v7 }
  0x50   : > { %524 = vmatpush.bf16.msra.mxu0 %v2268_v8  ;;  %733 = vmatpush.bf16.msra.mxu2 %v2285_v20 }
  0x51   : > { %629 = vmatpush.bf16.msra.mxu1 %v2276_v9 }
  0x54   : > { %525 = vmatpush.bf16.msra.mxu0 %v2267_v10  ;;  %734 = vmatpush.bf16.msra.mxu2 %v2284_v21 }
  0x55   : > { %630 = vmatpush.bf16.msra.mxu1 %v2275_v11 }
  0x58   : > { %526 = vmatpush.bf16.msra.mxu0 %v2266_v12  ;;  %735 = vmatpush.bf16.msra.mxu2 %v2283_v23 }
  0x59   : > { %631 = vmatpush.bf16.msra.mxu1 %v2274_v13 }
  0x5c   : > { %527 = vmatpush.bf16.msra.mxu0 %v2265_v15  ;;  %736 = vmatpush.bf16.msra.mxu2 %v2282_v24 }
  0x5d   : > { %632 = vmatpush.bf16.msra.mxu1 %v2273_v16 }
  0x5f   : > { %528 = vmatmul.bf16.vlgmr.msra.gmra.mxu0 %v2261_v17 }
  0x60   : > { %633 = vmatmul.bf16.vlgmr.msra.gmra.mxu1 %v2261_v17  ;;  %737 = vmatpush.bf16.msra.mxu2 %v2281_v25 }
  0x63   : > { %738 = vmatmul.bf16.vlgmr.msra.gmra.mxu2 %v2261_v17 }
  0x6f   : > { %533 = vmatmul.bf16.gmra.mxu0 %v2262_v22 }
  0x70   : > { %638 = vmatmul.bf16.gmra.mxu1 %v2262_v22 }
  0x73   : > { %743 = vmatmul.bf16.gmra.mxu2 %v2262_v22 }
  0x7f   : > { %538 = vmatmul.bf16.gmra.mxu0 %v2263_v26 }
  0x80   : > { %643 = vmatmul.bf16.gmra.mxu1 %v2263_v26 }
  0x83   : > { %748 = vmatmul.bf16.gmra.mxu2 %v2263_v26 }
  0x8f   : > { %543 = vmatmul.bf16.gmra.mxu0 %v2264_v27 }
  0x90   : > { %648 = vmatmul.bf16.gmra.mxu1 %v2264_v27 }
  0x93   : > { %753 = vmatmul.bf16.gmra.mxu2 %v2264_v27 }
  0xdc   : > { %v529_v29 = vpop.f32.mrf.mxu0 }
  0xdd   : > { %v634_v30 = vpop.f32.mrf.mxu1  ;;  %v530_v31 = vadd.f32 %v2965_v28, %v529_v29 }
  0xde   : > { %v635_v55 = vadd.f32 %v2393_v42, %v634_v30 }
  0xdf   : > { %v549_v32 = vpack.c.bf16 %v530_v31, %v530_v31 }
  0xe0   : > { %v654_v0 = vpack.c.bf16 %v635_v55, %v635_v55 }
  0xe1   : > { %v775_v36 = vunpack.c.l.b16 %v549_v32 }
  0xe2   : > { %v795_v4 = vunpack.c.l.b16 %v654_v0 }
  0xe4   : > { %v531_v33 = vpop.f32.mrf.mxu0 }
  0xe5   : > { %v636_v34 = vpop.f32.mrf.mxu1  ;;  %v532_v35 = vadd.f32 %v2965_v28, %v531_v33 }
  0xe6   : > { %v637_v51 = vadd.f32 %v2393_v42, %v636_v34  ;;  %v739_v1 = vpop.f32.mrf.mxu2 }
  0xe7   : > { %v550_v37 = vpack.c.bf16 %v532_v35, %v532_v35 }
  0xe8   : > { %v655_v59 = vpack.c.bf16 %v637_v51, %v637_v51 }
  0xe9   : > { %v776_v38 = vunpack.c.l.b16 %v550_v37  ;;  %v2394_v37 = vld [vmem:[%s3578_s6] ss:$0 sm:$0xff] }
  0xea   : > { %v796_v2 = vunpack.c.l.b16 %v655_v59 }
  0xeb   : > { %v2969_v39 = vpack.c.b16 %v776_v38, %v775_v36 }
  0xec   : > { %v534_v40 = vpop.f32.mrf.mxu0  ;;  %v2987_v5 = vpack.c.b16 %v796_v2, %v795_v4 }
  0xed   : > { %v639_v41 = vpop.f32.mrf.mxu1  ;;  %1027 = vrot.lane.b32.xlu2 %v2969_v39, %s2756_s20  ;;  %v535_v43 = vadd.f32 %v2965_v28, %v534_v40 }
  0xee   : > { %v640_v44 = vadd.f32 %v2393_v42, %v639_v41  ;;  %v741_v10 = vpop.f32.mrf.mxu2 }
  0xef   : > { %v551_v45 = vpack.c.bf16 %v535_v43, %v535_v43  ;;  %v740_v43 = vadd.f32 %v2394_v37, %v739_v1 }
  0xf0   : > { %v656_v48 = vpack.c.bf16 %v640_v44, %v640_v44  ;;  %v742_v44 = vadd.f32 %v2394_v37, %v741_v10 }
  0xf1   : > { %v777_v52 = vunpack.c.l.b16 %v551_v45  ;;  %v759_v51 = vpack.c.bf16 %v740_v43, %v740_v43 }
  0xf2   : > { %v797_v56 = vunpack.c.l.b16 %v656_v48 }
  0xf4   : > { %v536_v46 = vpop.f32.mrf.mxu0 }
  0xf5   : > { %v641_v47 = vpop.f32.mrf.mxu1  ;;  %v537_v49 = vadd.f32 %v2965_v28, %v536_v46 }
  0xf6   : > { %v642_v50 = vadd.f32 %v2393_v42, %v641_v47  ;;  %v3000_v20 = vpop.f32.mrf.mxu2 }
  0xf7   : > { %v552_v53 = vpack.c.bf16 %v537_v49, %v537_v49 }
  0xf8   : > { %v657_v54 = vpack.c.bf16 %v642_v50, %v642_v50 }
  0xf9   : > { %v778_v57 = vunpack.c.l.b16 %v552_v53 }
  0xfa   : > { %v798_v58 = vunpack.c.l.b16 %v657_v54 }
  0xfb   : > { %v2978_v60 = vpack.c.b16 %v778_v57, %v777_v52  ;;  %v760_v52 = vpack.c.bf16 %v742_v44, %v742_v44 }
  0xfc   : > { %v2980_v61 = vpack.c.b16 %v798_v58, %v797_v56  ;;  %v539_v62 = vpop.f32.mrf.mxu0 }
  0xfd   : > { %v644_v63 = vpop.f32.mrf.mxu1  ;;  %1029 = vrot.lane.b32.xlu2 %v2978_v60, %s2756_s20  ;;  %v540_v3 = vadd.f32 %v2965_v28, %v539_v62  ;;  %v963_v58 = vunpack.c.l.b16 %v760_v52 }
  0xfe   : > { %1037 = vrot.lane.b32.xlu1 %v2980_v61, %s2756_s20  ;;  %v645_v14 = vadd.f32 %v2393_v42, %v644_v63  ;;  %v746_v29 = vpop.f32.mrf.mxu2  ;;  %v824_v57 = vsel %vm807_vm0, %v2980_v61, 0 }
  0xff   : > { %v553_v6 = vpack.c.bf16 %v540_v3, %v540_v3 }
 0x100   : > { %v658_v19 = vpack.c.bf16 %v645_v14, %v645_v14 }
 0x101   : > { %v779_v11 = vunpack.c.l.b16 %v553_v6  ;;  %v745_v6 = vadd.f32 %v2394_v37, %v3000_v20 }
 0x102   : > { %v799_v22 = vunpack.c.l.b16 %v658_v19 }
 0x104   : > { %v541_v7 = vpop.f32.mrf.mxu0 }
 0x105   : > { %v646_v8 = vpop.f32.mrf.mxu1  ;;  %v542_v9 = vadd.f32 %v2965_v28, %v541_v7  ;;  %1259 = vrot.lane.b32.xlu2 %v2980_v61, %s2757_s18  ;;  %v747_v7 = vadd.f32 %v2394_v37, %v746_v29 }
 0x106   : > { %1035 = vrot.lane.b32.xlu1 %v2987_v5, %s2756_s20  ;;  %v647_v13 = vadd.f32 %v2393_v42, %v646_v8  ;;  %v749_v36 = vpop.f32.mrf.mxu2 }
 0x107   : > { %v554_v12 = vpack.c.bf16 %v542_v9, %v542_v9  ;;  %v750_v41 = vadd.f32 %v2394_v37, %v749_v36 }
 0x108   : > { %v659_v17 = vpack.c.bf16 %v647_v13, %v647_v13  ;;  %v762_v13 = vpack.c.bf16 %v747_v7, %v747_v7 }
 0x109   : > { %v780_v15 = vunpack.c.l.b16 %v554_v12  ;;  %v763_v48 = vpack.c.bf16 %v750_v41, %v750_v41  ;;  %v761_v12 = vpack.c.bf16 %v745_v6, %v745_v6 }
 0x10a   : > { %v800_v21 = vunpack.c.l.b16 %v659_v17  ;;  %v965_v17 = vunpack.c.l.b16 %v762_v13 }
 0x10b   : > { %v2994_v16 = vpack.c.b16 %v780_v15, %v779_v11  ;;  %v966_v50 = vunpack.c.l.b16 %v763_v48  ;;  %v964_v15 = vunpack.c.l.b16 %v761_v12 }
 0x10c   : > { %v805_v24 = vpack.c.b16 %v800_v21, %v799_v22  ;;  %v544_v33 = vpop.f32.mrf.mxu0 }
 0x10d   : > { %v649_v18 = vpop.f32.mrf.mxu1  ;;  %1257 = vrot.lane.b32.xlu2 %v2987_v5, %s2757_s18  ;;  %v545_v46 = vadd.f32 %v2965_v28, %v544_v33 }
 0x10e   : > { %1031 = vrot.lane.b32.xlu1 %v2994_v16, %s2756_s20  ;;  %v650_v23 = vadd.f32 %v2393_v42, %v649_v18  ;;  %v827_v40 = vsel %vm807_vm0, %v805_v24, 0 }
 0x10f   : > { %v555_v54 = vpack.c.bf16 %v545_v46, %v545_v46 }
 0x110   : > { %v660_v26 = vpack.c.bf16 %v650_v23, %v650_v23 }
 0x111   : > { %v781_v59 = vunpack.c.l.b16 %v555_v54 }
 0x112   : > { %v801_v31 = vunpack.c.l.b16 %v660_v26 }
 0x114   : > { %v546_v38 = vpop.f32.mrf.mxu0 }
 0x115   : > { %v651_v25 = vpop.f32.mrf.mxu1  ;;  %1471 = vrot.lane.b32.xlu2 %v2969_v39, %s2758_s27  ;;  %v547_v47 = vadd.f32 %v2965_v28, %v546_v38  ;;  %v962_v28 = vunpack.c.l.b16 %v759_v51 }
 0x116   : > { %v652_v27 = vadd.f32 %v2393_v42, %v651_v25  ;;  %1483 = vrot.lane.b32.xlu1 %v805_v24, %s2758_s27  ;;  %v751_v42 = vpop.f32.mrf.mxu2 }
 0x117   : > { %v752_v45 = vadd.f32 %v2394_v37, %v751_v42  ;;  %v556_v55 = vpack.c.bf16 %v547_v47, %v547_v47  ;;  %v3030_v0 = vpack.c.b16 %v963_v58, %v962_v28 }
 0x118   : > { %v661_v30 = vpack.c.bf16 %v652_v27, %v652_v27 }
 0x119   : > { %v764_v49 = vpack.c.bf16 %v752_v45, %v752_v45  ;;  %v782_v62 = vunpack.c.l.b16 %v556_v55 }
 0x11a   : > { %v802_v32 = vunpack.c.l.b16 %v661_v30 }
 0x11b   : > { %v967_v53 = vunpack.c.l.b16 %v764_v49  ;;  %v786_v1 = vpack.c.b16 %v782_v62, %v781_v59 }
 0x11c   : > { %v806_v34 = vpack.c.b16 %v802_v32, %v801_v31 }
 0x11d   : > { %v3021_v56 = vpack.c.b16 %v967_v53, %v966_v50 }
 0x11e   : > { %1041 = vrot.lane.b32.xlu0 %v806_v34, %s2756_s20  ;;  %1481 = vrot.lane.b32.xlu1 %v2980_v61, %s2758_s27  ;;  %v830_v35 = vsel %vm807_vm0, %v806_v34, 0  ;;  %v754_v63 = vpop.f32.mrf.mxu2  ;;  %v821_v61 = vsel %vm807_vm0, %v2987_v5, 0 }
 0x11f   : > { %1485 = vrot.lane.b32.xlu2 %v806_v34, %s2758_s27  ;;  %836 = vmatpush.bf16.xpose.msra.mxu3 %v830_v35  ;;  %v755_v3 = vadd.f32 %v2394_v37, %v754_v63 }
 0x121   : > { %v765_v8 = vpack.c.bf16 %v755_v3, %v755_v3 }
 0x123   : > { %v968_v10 = vunpack.c.l.b16 %v765_v8 }
 0x126   : > { %1039 = vrot.lane.b32.xlu0 %v805_v24, %s2756_s20  ;;  %1249 = vrot.lane.b32.xlu1 %v2969_v39, %s2757_s18  ;;  %v756_v2 = vpop.f32.mrf.mxu2 }
 0x127   : > { %837 = vmatpush.bf16.xpose.msra.mxu3 %v827_v40  ;;  %1253 = vrot.lane.b32.xlu2 %v2994_v16, %s2757_s18  ;;  %v757_v4 = vadd.f32 %v2394_v37, %v756_v2 }
 0x129   : > { %v766_v9 = vpack.c.bf16 %v757_v4, %v757_v4 }
 0x12b   : > { %v969_v11 = vunpack.c.l.b16 %v766_v9 }
 0x12d   : > { %v3044_v14 = vpack.c.b16 %v969_v11, %v968_v10 }
 0x12e   : > { %1261 = vrot.lane.b32.xlu0 %v805_v24, %s2757_s18  ;;  %1473 = vrot.lane.b32.xlu1 %v2978_v60, %s2758_s27 }
 0x12f   : > { %838 = vmatpush.bf16.xpose.msra.mxu3 %v824_v57  ;;  %1192 = vrot.lane.b32.xlu2 %v3021_v56, %s2756_s20 }
 0x130   : > { %994 = vmatpush.bf16.msrb.mxu0 %v3044_v14 }
 0x134   : > { %995 = vmatpush.bf16.msrb.mxu0 %v3021_v56 }
 0x136   : > { %1263 = vrot.lane.b32.xlu0 %v806_v34, %s2757_s18  ;;  %1255 = vrot.lane.b32.xlu1 %v786_v1, %s2757_s18 }
 0x137   : > { %839 = vmatpush.bf16.xpose.msra.mxu3 %v821_v61  ;;  %1188 = vrot.lane.b32.xlu2 %v3030_v0, %s2756_s20 }
 0x13e   : > { %1479 = vrot.lane.b32.xlu0 %v2987_v5, %s2758_s27  ;;  %2191 = vmatmul.msk.bf16.vlgmr.msra.gmra.mxu3 %vm807_vm0, %v2969_v39  ;;  %v3051_v39 = vpack.c.b16 %v965_v17, %v964_v15 }
 0x13f   : > { %1477 = vrot.lane.b32.xlu2 %v786_v1, %s2758_s27  ;;  %1194 = vrot.lane.b32.xlu1 %v3044_v14, %s2756_s20 }
 0x140   : > { %996 = vmatpush.bf16.msrb.mxu0 %v3051_v39 }
 0x144   : > { %997 = vmatpush.bf16.msrb.mxu0 %v3030_v0 }
 0x146   : > { %1033 = vrot.lane.b32.xlu0 %v786_v1, %s2756_s20 }
 0x147   : > { %1638 = vrot.lane.b32.xlu1 %v3044_v14, %s2758_s27  ;;  %v1028_v18 = vpop.permute.xlu2 %1027 }
 0x14e   : > { %1251 = vrot.lane.b32.xlu0 %v2978_v60, %s2757_s18  ;;  %2192 = vmatmul.msk.bf16.gmra.mxu3 %vm807_vm0, %v2978_v60 }
 0x156   : > { %1475 = vrot.lane.b32.xlu0 %v2994_v16, %s2758_s27 }
 0x157   : > { %v1030_v20 = vpop.permute.xlu2 %1029 }
 0x15e   : > { %2193 = vmatmul.msk.bf16.gmra.mxu3 %vm807_vm0, %v2994_v16  ;;  %1190 = vrot.lane.b32.xlu0 %v3051_v39, %s2756_s20 }
 0x15f   : > { %v1260_v60 = vpop.permute.xlu2 %1259 }
 0x160   : > { %v1281_v48 = vsel %vm807_vm0, %v1260_v60, 0 }
 0x167   : > { %v1258_v26 = vpop.permute.xlu2 %1257 }
 0x168   : > { %v1278_v52 = vsel %vm807_vm0, %v1258_v26, 0 }
 0x16e   : > { %2194 = vmatmul.msk.bf16.gmra.mxu3 %vm807_vm0, %v786_v1 }
 0x16f   : > { %v3070_v30 = vpop.permute.xlu2 %1471 }
 0x170   : > { %v1038_v5 = vpop.permute.xlu1 %1037 }
 0x171   : > { %v1059_v32 = vsel %vm807_vm0, %v1038_v5, 0 }
 0x178   : > { %v1036_v19 = vpop.permute.xlu1 %1035 }
 0x179   : > { %v1486_v34 = vpop.permute.xlu2 %1485  ;;  %v1056_v36 = vsel %vm807_vm0, %v1036_v19, 0 }
 0x17a   : > { %v1509_v38 = vsel %vm807_vm0, %v1486_v34, 0 }
 0x180   : > { %v1032_v21 = vpop.permute.xlu1 %1031 }
 0x181   : > { %v1254_v42 = vpop.permute.xlu2 %1253 }
 0x188   : > { %v1484_v22 = vpop.permute.xlu1 %1483 }
 0x189   : > { %v1506_v44 = vsel %vm807_vm0, %v1484_v22, 0  ;;  %v1193_v47 = vpop.permute.xlu2 %1192 }
 0x190   : > { %v1042_v23 = vpop.permute.xlu0 %1041  ;;  %v1482_v24 = vpop.permute.xlu1 %1481 }
 0x191   : > { %v1065_v25 = vsel %vm807_vm0, %v1042_v23, 0  ;;  %v1503_v49 = vsel %vm807_vm0, %v1482_v24, 0  ;;  %v1189_v63 = vpop.permute.xlu2 %1188 }
 0x192   : > { %1071 = vmatpush.bf16.xpose.msrb.mxu1 %v1065_v25 }
 0x198   : > { %v1040_v27 = vpop.permute.xlu0 %1039  ;;  %v1250_v29 = vpop.permute.xlu1 %1249 }
 0x199   : > { %v1062_v16 = vsel %vm807_vm0, %v1040_v27, 0  ;;  %v1478_v11 = vpop.permute.xlu2 %1477 }
 0x19a   : > { %1072 = vmatpush.bf16.xpose.msrb.mxu1 %v1062_v16 }
 0x1a0   : > { %v1262_v31 = vpop.permute.xlu0 %1261  ;;  %v3073_v33 = vpop.permute.xlu1 %1473 }
 0x1a1   : > { %v1284_v43 = vsel %vm807_vm0, %v1262_v31, 0 }
 0x1a2   : > { %1073 = vmatpush.bf16.xpose.msrb.mxu1 %v1059_v32 }
 0x1a8   : > { %v1264_v35 = vpop.permute.xlu0 %1263  ;;  %v1256_v40 = vpop.permute.xlu1 %1255 }
 0x1a9   : > { %v1287_v37 = vsel %vm807_vm0, %v1264_v35, 0 }
 0x1aa   : > { %1074 = vmatpush.bf16.xpose.msrb.mxu1 %v1056_v36  ;;  %1293 = vmatpush.bf16.xpose.msrb.mxu3 %v1287_v37 }
 0x1b0   : > { %v1480_v41 = vpop.permute.xlu0 %1479 }
 0x1b1   : > { %2199 = vmatmul.msk.bf16.vlgmr.msrb.gmra.mxu1 %vm807_vm0, %v1028_v18  ;;  %v1195_v45 = vpop.permute.xlu1 %1194  ;;  %v1500_v53 = vsel %vm807_vm0, %v1480_v41, 0 }
 0x1b2   : > { %1515 = vmatpush.bf16.xpose.msra.mxu1 %v1509_v38  ;;  %1294 = vmatpush.bf16.xpose.msrb.mxu3 %v1284_v43 }
 0x1b3   : > { %1216 = vmatpush.bf16.msrb.mxu2 %v1195_v45 }
 0x1b7   : > { %1217 = vmatpush.bf16.msrb.mxu2 %v1193_v47 }
 0x1b8   : > { %v1034_v46 = vpop.permute.xlu0 %1033 }
 0x1b9   : > { %v1639_v15 = vpop.permute.xlu1 %1638 }
 0x1ba   : > { %1516 = vmatpush.bf16.xpose.msra.mxu1 %v1506_v44  ;;  %1295 = vmatpush.bf16.xpose.msrb.mxu3 %v1281_v48 }
 0x1c0   : > { %v1252_v50 = vpop.permute.xlu0 %1251 }
 0x1c1   : > { %v841_v51 = vpop.f32.mrf.mxu3  ;;  %2200 = vmatmul.msk.bf16.gmra.mxu1 %vm807_vm0, %v1030_v20 }
 0x1c2   : > { %1517 = vmatpush.bf16.xpose.msra.mxu1 %v1503_v49  ;;  %1296 = vmatpush.bf16.xpose.msrb.mxu3 %v1278_v52  ;;  %v862_v54 = vsel %vm861_vm1, %v841_v51, -inf }
 0x1c3   : > { %863 = vmax.xlane.f32.xlu2 %v862_v54 }
 0x1c8   : > { %v1476_v55 = vpop.permute.xlu0 %1475 }
 0x1c9   : > { %v3087_v57 = vpop.f32.mrf.mxu3  ;;  %2207 = vmatmul.msk.bf16.vlgmr.msrb.gmra.mxu3 %vm807_vm0, %v1250_v29 }
 0x1ca   : > { %1518 = vmatpush.bf16.xpose.msra.mxu1 %v1500_v53  ;;  %v865_v28 = vsel %vm861_vm1, %v3087_v57, -inf }
 0x1cb   : > { %866 = vmax.xlane.f32.xlu2 %v865_v28 }
 0x1d0   : > { %v1191_v58 = vpop.permute.xlu0 %1190 }
 0x1d1   : > { %v846_v59 = vpop.f32.mrf.mxu3  ;;  %2201 = vmatmul.msk.bf16.gmra.mxu1 %vm807_vm0, %v1032_v21  ;;  %1218 = vmatpush.bf16.msrb.mxu2 %v1191_v58 }
 0x1d2   : > { %v868_v62 = vsel %vm861_vm1, %v846_v59, -inf }
 0x1d3   : > { %869 = vmax.xlane.f32.xlu2 %v868_v62 }
 0x1d5   : > { %1219 = vmatpush.bf16.msrb.mxu2 %v1189_v63 }
 0x1d9   : > { %v3094_v1 = vpop.f32.mrf.mxu3  ;;  %2208 = vmatmul.msk.bf16.gmra.mxu3 %vm807_vm0, %v1252_v50  ;;  %1660 = vmatpush.bf16.msra.mxu2 %v1639_v15 }
 0x1da   : > { %v871_v61 = vsel %vm861_vm1, %v3094_v1, -inf }
 0x1db   : > { %872 = vmax.xlane.f32.xlu0 %v871_v61 }
 0x1e1   : > { %v3099_v2 = vpop.f32.mrf.mxu3  ;;  %2202 = vmatmul.msk.bf16.gmra.mxu1 %vm807_vm0, %v1034_v46 }
 0x1e2   : > { %v874_v3 = vsel %vm861_vm1, %v3099_v2, -inf }
 0x1e3   : > { %875 = vmax.xlane.f32.xlu0 %v874_v3 }
 0x1e9   : > { %v3104_v4 = vpop.f32.mrf.mxu3  ;;  %2209 = vmatmul.msk.bf16.gmra.mxu3 %vm807_vm0, %v1254_v42 }
 0x1ea   : > { %v877_v6 = vsel %vm861_vm1, %v3104_v4, -inf }
 0x1eb   : > { %878 = vmax.xlane.f32.xlu1 %v877_v6 }
 0x1f1   : > { %v3109_v7 = vpop.f32.mrf.mxu3  ;;  %2215 = vmatmul.msk.bf16.vlgmr.msra.gmra.mxu1 %vm807_vm0, %v3070_v30 }
 0x1f2   : > { %v880_v8 = vsel %vm861_vm1, %v3109_v7, -inf }
 0x1f3   : > { %881 = vmax.xlane.f32.xlu2 %v880_v8 }
 0x1f9   : > { %v3115_v9 = vpop.f32.mrf.mxu3  ;;  %2210 = vmatmul.msk.bf16.gmra.mxu3 %vm807_vm0, %v1256_v40 }
 0x1fa   : > { %v883_v10 = vsel %vm861_vm1, %v3115_v9, -inf }
 0x1fb   : > { %884 = vmax.xlane.f32.xlu0 %v883_v10 }
 0x201   : > { %2216 = vmatmul.msk.bf16.gmra.mxu1 %vm807_vm0, %v3073_v33 }
 0x211   : > { %2217 = vmatmul.msk.bf16.gmra.mxu1 %vm807_vm0, %v1476_v55 }
 0x221   : > { %2218 = vmatmul.msk.bf16.gmra.mxu1 %vm807_vm0, %v1478_v11 }
 0x22e   : > { %v3124_v12 = vpop.f32.mrf.mxu1 }
 0x22f   : > { %v1096_v13 = vsel %vm861_vm1, %v3124_v12, -inf }
 0x230   : > { %1097 = vmax.xlane.f32.xlu0 %v1096_v13 }
 0x236   : > { %v3128_v17 = vpop.f32.mrf.mxu1  ;;  %v864_v5 = vpop.xlane.xlu2 %863 }
 0x237   : > { %v886_v18 = vsub.f32 %v841_v51, %v864_v5  ;;  %v1099_v31 = vsel %vm861_vm1, %v3128_v17, -inf }
 0x239   : > { %v894_v19 = vmul.f32 1.442695, %v886_v18 }
 0x23b   : > { %2396 = vpow2.f32 %v894_v19 }
 0x23e   : > { %v3130_v20 = vpop.f32.mrf.mxu1  ;;  %v867_v24 = vpop.xlane.xlu2 %866 }
 0x23f   : > { %v1102_v21 = vsel %vm861_vm1, %v3130_v20, -inf  ;;  %v887_v34 = vsub.f32 %v3087_v57, %v867_v24 }
 0x240   : > { %1103 = vmax.xlane.f32.xlu0 %v1102_v21 }
 0x241   : > { %v3134_v22 = vpop.eup %2396  ;;  %v896_v40 = vmul.f32 1.442695, %v887_v34 }
 0x242   : > { %v910_v23 = vsel %vm861_vm1, %v3134_v22, 0.0 }
 0x246   : > { %v3136_v60 = vpop.f32.mrf.mxu1  ;;  %v870_v16 = vpop.xlane.xlu2 %869 }
 0x247   : > { %v888_v30 = vsub.f32 %v846_v59, %v870_v16  ;;  %v1105_v45 = vsel %vm861_vm1, %v3136_v60, -inf }
 0x248   : > { %911 = vadd.xlane.f32.xlu0 %v910_v23 }
 0x249   : > { %v898_v33 = vmul.f32 1.442695, %v888_v30 }
 0x24b   : > { %2398 = vpow2.f32 %v898_v33 }
 0x24c   : > { %v3140_v25 = vpop.f32.mrf.mxu3  ;;  %2400 = vpow2.f32 %v896_v40 }
 0x24d   : > { %v1318_v26 = vsel %vm861_vm1, %v3140_v25, -inf }
 0x24e   : > { %v3144_v27 = vpop.f32.mrf.mxu1  ;;  %1319 = vmax.xlane.f32.xlu1 %v1318_v26  ;;  %v873_v41 = vpop.xlane.xlu0 %872 }
 0x24f   : > { %v889_v43 = vsub.f32 %v3094_v1, %v873_v41  ;;  %v1108_v59 = vsel %vm861_vm1, %v3144_v27, -inf }
 0x251   : > { %v3161_v42 = vpop.eup %2398  ;;  %v900_v49 = vmul.f32 1.442695, %v889_v43 }
 0x252   : > { %v916_v48 = vsel %vm861_vm1, %v3161_v42, 0.0  ;;  %v3174_v50 = vpop.eup %2400 }
 0x253   : > { %2402 = vpow2.f32 %v900_v49  ;;  %v913_v52 = vsel %vm861_vm1, %v3174_v50, 0.0 }
 0x254   : > { %v3146_v29 = vpop.f32.mrf.mxu3 }
 0x255   : > { %v1321_v36 = vsel %vm861_vm1, %v3146_v29, -inf }
 0x256   : > { %v3150_v32 = vpop.f32.mrf.mxu1  ;;  %1100 = vmax.xlane.f32.xlu1 %v1099_v31  ;;  %v876_v55 = vpop.xlane.xlu0 %875 }
 0x257   : > { %v1111_v53 = vsel %vm861_vm1, %v3150_v32, -inf  ;;  %v890_v28 = vsub.f32 %v3099_v2, %v876_v55 }
 0x259   : > { %v3184_v57 = vpop.eup %2402  ;;  %v902_v61 = vmul.f32 1.442695, %v890_v28 }
 0x25a   : > { %v919_v62 = vsel %vm861_vm1, %v3184_v57, 0.0 }
 0x25b   : > { %2404 = vpow2.f32 %v902_v61 }
 0x25c   : > { %v3153_v35 = vpop.f32.mrf.mxu3 }
 0x25d   : > { %v1324_v37 = vsel %vm861_vm1, %v3153_v35, -inf }
 0x25e   : > { %v3159_v38 = vpop.f32.mrf.mxu1  ;;  %1322 = vmax.xlane.f32.xlu1 %v1321_v36  ;;  %1325 = vmax.xlane.f32.xlu0 %v1324_v37  ;;  %v879_v2 = vpop.xlane.xlu1 %878 }
 0x25f   : > { %v891_v13 = vsub.f32 %v3104_v4, %v879_v2  ;;  %v1114_v15 = vsel %vm861_vm1, %v3159_v38, -inf }
 0x261   : > { %v904_v21 = vmul.f32 1.442695, %v891_v13  ;;  %v3210_v23 = vpop.eup %2404 }
 0x262   : > { %v922_v24 = vsel %vm861_vm1, %v3210_v23, 0.0 }
 0x264   : > { %v3164_v44 = vpop.f32.mrf.mxu3 }
 0x265   : > { %v1327_v46 = vsel %vm861_vm1, %v3164_v44, -inf }
 0x266   : > { %v3170_v47 = vpop.f32.mrf.mxu1  ;;  %1106 = vmax.xlane.f32.xlu1 %v1105_v45  ;;  %1328 = vmax.xlane.f32.xlu2 %v1327_v46  ;;  %v882_v3 = vpop.xlane.xlu2 %881 }
 0x267   : > { %917 = vadd.xlane.f32.xlu0 %v916_v48  ;;  %v892_v8 = vsub.f32 %v3109_v7, %v882_v3  ;;  %v1117_v30 = vsel %vm861_vm1, %v3170_v47, -inf }
 0x269   : > { %v906_v7 = vmul.f32 1.442695, %v892_v8 }
 0x26b   : > { %2406 = vpow2.f32 %v906_v7 }
 0x26c   : > { %v3176_v51 = vpop.f32.mrf.mxu3 }
 0x26d   : > { %v1330_v5 = vsel %vm861_vm1, %v3176_v51, -inf }
 0x26e   : > { %v3182_v54 = vpop.f32.mrf.mxu1  ;;  %914 = vadd.xlane.f32.xlu1 %v913_v52  ;;  %1112 = vmax.xlane.f32.xlu2 %v1111_v53  ;;  %v885_v6 = vpop.xlane.xlu0 %884 }
 0x26f   : > { %v893_v10 = vsub.f32 %v3115_v9, %v885_v6  ;;  %v1540_v48 = vsel %vm861_vm1, %v3182_v54, -inf }
 0x271   : > { %v908_v9 = vmul.f32 1.442695, %v893_v10  ;;  %v3222_v31 = vpop.eup %2406 }
 0x272   : > { %v928_v36 = vsel %vm861_vm1, %v3222_v31, 0.0 }
 0x273   : > { %2408 = vpow2.f32 %v908_v9 }
 0x274   : > { %v3187_v58 = vpop.f32.mrf.mxu3  ;;  %2410 = vpow2.f32 %v904_v21 }
 0x275   : > { %v1333_v63 = vsel %vm861_vm1, %v3187_v58, -inf }
 0x276   : > { %v3195_v1 = vpop.f32.mrf.mxu1  ;;  %1109 = vmax.xlane.f32.xlu1 %v1108_v59  ;;  %920 = vadd.xlane.f32.xlu2 %v919_v62 }
 0x277   : > { %1334 = vmax.xlane.f32.xlu0 %v1333_v63  ;;  %v1543_v43 = vsel %vm861_vm1, %v3195_v1, -inf }
 0x279   : > { %v3224_v33 = vpop.eup %2408 }
 0x27a   : > { %v3226_v34 = vpop.eup %2410  ;;  %v931_v37 = vsel %vm861_vm1, %v3224_v33, 0.0 }
 0x27b   : > { %v925_v41 = vsel %vm861_vm1, %v3226_v34, 0.0 }
 0x27c   : > { %v3199_v11 = vpop.f32.mrf.mxu3 }
 0x27d   : > { %v1336_v18 = vsel %vm861_vm1, %v3199_v11, -inf }
 0x27e   : > { %v3208_v19 = vpop.f32.mrf.mxu1  ;;  %1115 = vmax.xlane.f32.xlu2 %v1114_v15  ;;  %1331 = vmax.xlane.f32.xlu1 %v1330_v5 }
 0x27f   : > { %1337 = vmax.xlane.f32.xlu0 %v1336_v18  ;;  %v1546_v45 = vsel %vm861_vm1, %v3208_v19, -inf }
 0x284   : > { %v3212_v4 = vpop.f32.mrf.mxu3 }
 0x285   : > { %v1339_v26 = vsel %vm861_vm1, %v3212_v4, -inf }
 0x286   : > { %v3218_v16 = vpop.f32.mrf.mxu1  ;;  %923 = vadd.xlane.f32.xlu1 %v922_v24  ;;  %1340 = vmax.xlane.f32.xlu2 %v1339_v26 }
 0x287   : > { %1118 = vmax.xlane.f32.xlu0 %v1117_v30  ;;  %v1549_v55 = vsel %vm861_vm1, %v3218_v16, -inf }
 0x28e   : > { %v3232_v40 = vpop.f32.mrf.mxu1  ;;  %929 = vadd.xlane.f32.xlu2 %v928_v36  ;;  %932 = vadd.xlane.f32.xlu1 %v931_v37 }
 0x28f   : > { %926 = vadd.xlane.f32.xlu0 %v925_v41  ;;  %v1552_v49 = vsel %vm861_vm1, %v3232_v40, -inf }
 0x296   : > { %v3240_v46 = vpop.f32.mrf.mxu1  ;;  %1544 = vmax.xlane.f32.xlu2 %v1543_v43  ;;  %1547 = vmax.xlane.f32.xlu1 %v1546_v45 }
 0x297   : > { %1541 = vmax.xlane.f32.xlu0 %v1540_v48  ;;  %v1555_v52 = vsel %vm861_vm1, %v3240_v46, -inf }
 0x29e   : > { %v3248_v53 = vpop.f32.mrf.mxu1  ;;  %1553 = vmax.xlane.f32.xlu2 %v1552_v49  ;;  %1556 = vmax.xlane.f32.xlu1 %v1555_v52 }
 0x29f   : > { %1550 = vmax.xlane.f32.xlu0 %v1549_v55  ;;  %v1558_v61 = vsel %vm861_vm1, %v3248_v53, -inf }
 0x2a3   : > { %v1098_v28 = vpop.xlane.xlu0 %1097 }
 0x2a4   : > { %v1120_v59 = vsub.f32 %v3124_v12, %v1098_v28 }
 0x2a6   : > { %v1128_v62 = vmul.f32 1.442695, %v1120_v59  ;;  %v3253_v63 = vpop.f32.mrf.mxu1 }
 0x2a7   : > { %1559 = vmax.xlane.f32.xlu0 %v1558_v61  ;;  %v1561_v3 = vsel %vm861_vm1, %v3253_v63, -inf }
 0x2a8   : > { %2412 = vpow2.f32 %v1128_v62  ;;  %1562 = vmax.xlane.f32.xlu2 %v1561_v3 }
 0x2ae   : > { %v3259_v6 = vpop.eup %2412 }
 0x2af   : > { %v1144_v2 = vsel %vm861_vm1, %v3259_v6, 0.0 }
 0x2b0   : > { %1145 = vadd.xlane.f32.xlu2 %v1144_v2 }
 0x2b3   : > { %v1104_v8 = vpop.xlane.xlu0 %1103 }
 0x2b4   : > { %v1122_v13 = vsub.f32 %v3130_v20, %v1104_v8 }
 0x2b6   : > { %v1132_v5 = vmul.f32 1.442695, %v1122_v13 }
 0x2c1   : > { %v1320_v12 = vpop.xlane.xlu1 %1319 }
 0x2c2   : > { %v1342_v10 = vsub.f32 %v3140_v25, %v1320_v12  ;;  %v912_v25 = vpop.xlane.xlu0 %911 }
 0x2c4   : > { %v1350_v15 = vmul.f32 1.442695, %v1342_v10 }
 0x2c6   : > { %2414 = vpow2.f32 %v1350_v15 }
 0x2c7   : > { %2416 = vpow2.f32 %v1132_v5 }
 0x2c8   : > { %1416 = vrot.lane.b32.xlu2 %v3044_v14, %s2757_s18 }
 0x2c9   : > { %v1101_v18 = vpop.xlane.xlu1 %1100 }
 0x2ca   : > { %v1121_v7 = vsub.f32 %v3128_v17, %v1101_v18 }
 0x2cc   : > { %v3268_v9 = vpop.eup %2414  ;;  %v1130_v21 = vmul.f32 1.442695, %v1121_v7 }
 0x2cd   : > { %v1366_v24 = vsel %vm861_vm1, %v3268_v9, 0.0  ;;  %v3274_v26 = vpop.eup %2416 }
 0x2ce   : > { %2418 = vpow2.f32 %v1130_v21  ;;  %1367 = vadd.xlane.f32.xlu1 %v1366_v24  ;;  %v1150_v17 = vsel %vm861_vm1, %v3274_v26, 0.0 }
 0x2d1   : > { %v3272_v20 = vpop.xlane.xlu1 %1322  ;;  %v3282_v36 = vpop.xlane.xlu0 %1325 }
 0x2d4   : > { %v3276_v30 = vpop.eup %2418 }
 0x2d5   : > { %v1147_v14 = vsel %vm861_vm1, %v3276_v30, 0.0 }
 0x2d6   : > { %1148 = vadd.xlane.f32.xlu0 %v1147_v14  ;;  %1151 = vadd.xlane.f32.xlu1 %v1150_v17 }
 0x2d9   : > { %v1107_v37 = vpop.xlane.xlu1 %1106  ;;  %v3284_v41 = vpop.xlane.xlu2 %1328 }
 0x2da   : > { %v1123_v43 = vsub.f32 %v3136_v60, %v1107_v37  ;;  %v918_v52 = vpop.xlane.xlu0 %917 }
 0x2dc   : > { %v1134_v45 = vmul.f32 1.442695, %v1123_v43 }
 0x2de   : > { %2420 = vpow2.f32 %v1134_v45 }
 0x2df   : > { %2422 = vrcp.f32 %v912_v25 }
 0x2e1   : > { %v915_v48 = vpop.xlane.xlu1 %914  ;;  %v1113_v49 = vpop.xlane.xlu2 %1112 }
 0x2e2   : > { %2424 = vrcp.f32 %v915_v48  ;;  %v1125_v55 = vsub.f32 %v3150_v32, %v1113_v49 }
 0x2e4   : > { %v3288_v28 = vpop.eup %2420  ;;  %v1138_v59 = vmul.f32 1.442695, %v1125_v55 }
 0x2e5   : > { %v1153_v62 = vsel %vm861_vm1, %v3288_v28, 0.0  ;;  %v2423_v61 = vpop.eup %2422 }
 0x2e6   : > { %2426 = vpow2.f32 %v1138_v59  ;;  %1154 = vadd.xlane.f32.xlu1 %v1153_v62  ;;  %v942_v60 = vmul.f32 %v2423_v61, %v3134_v22  ;;  %v1343_v61 = vsub.f32 %v3146_v29, %v3272_v20 }
 0x2e8   : > { %v2425_v3 = vpop.eup %2424 }
 0x2e9   : > { %v943_v2 = vmul.f32 %v2425_v3, %v3174_v50  ;;  %v1110_v8 = vpop.xlane.xlu1 %1109  ;;  %v921_v12 = vpop.xlane.xlu2 %920 }
 0x2ea   : > { %v1124_v10 = vsub.f32 %v3144_v27, %v1110_v8  ;;  %v3295_v13 = vpop.xlane.xlu0 %1334  ;;  %1636 = vrot.lane.b32.xlu0 %v3021_v56, %s2758_s27  ;;  %2428 = vrcp.f32 %v921_v12  ;;  %v1352_v8 = vmul.f32 1.442695, %v1343_v61 }
 0x2eb   : > { %v950_v32 = vpack.c.bf16 %v943_v2, %v942_v60 }
 0x2ec   : > { %v3299_v15 = vpop.eup %2426  ;;  %v1136_v5 = vmul.f32 1.442695, %v1124_v10 }
 0x2ed   : > { %2195 = vmatmul.msk.bf16.vlgmr.msrb.gmra.mxu0 %vm861_vm1, %v950_v32  ;;  %v1159_v22 = vsel %vm861_vm1, %v3299_v15, 0.0 }
 0x2ee   : > { %2430 = vpow2.f32 %v1136_v5  ;;  %1160 = vadd.xlane.f32.xlu1 %v1159_v22 }
 0x2ef   : > { %2432 = vrcp.f32 %v918_v52 }
 0x2f0   : > { %v2429_v18 = vpop.eup %2428 }
 0x2f1   : > { %v1116_v50 = vpop.xlane.xlu2 %1115  ;;  %v3308_v21 = vpop.xlane.xlu1 %1331  ;;  %v945_v14 = vmul.f32 %v2429_v18, %v3184_v57 }
 0x2f2   : > { %v3304_v27 = vpop.xlane.xlu0 %1337  ;;  %v1126_v52 = vsub.f32 %v3159_v38, %v1116_v50 }
 0x2f4   : > { %v3306_v7 = vpop.eup %2430  ;;  %v1140_v59 = vmul.f32 1.442695, %v1126_v52 }
 0x2f5   : > { %v1156_v24 = vsel %vm861_vm1, %v3306_v7, 0.0  ;;  %v2433_v25 = vpop.eup %2432 }
 0x2f6   : > { %1157 = vadd.xlane.f32.xlu2 %v1156_v24  ;;  %v944_v37 = vmul.f32 %v2433_v25, %v3161_v42 }
 0x2f8   : > { %v951_v45 = vpack.c.bf16 %v945_v14, %v944_v37 }
 0x2f9   : > { %v3313_v17 = vpop.xlane.xlu2 %1340  ;;  %v924_v48 = vpop.xlane.xlu1 %923 }
 0x2fa   : > { %v3316_v43 = vpop.xlane.xlu0 %1118  ;;  %2434 = vrcp.f32 %v924_v48 }
 0x2fd   : > { %2196 = vmatmul.msk.bf16.gmra.mxu0 %vm861_vm1, %v951_v45 }
 0x300   : > { %v2435_v57 = vpop.eup %2434 }
 0x301   : > { %v930_v49 = vpop.xlane.xlu2 %929  ;;  %v946_v3 = vmul.f32 %v2435_v57, %v3210_v23  ;;  %v933_v38 = vpop.xlane.xlu1 %932 }
 0x302   : > { %v927_v55 = vpop.xlane.xlu0 %926 }
 0x303   : > { %2436 = vrcp.f32 %v927_v55 }
 0x304   : > { %2438 = vpow2.f32 %v1140_v59 }
 0x305   : > { %2440 = vrcp.f32 %v930_v49 }
 0x306   : > { %2442 = vrcp.f32 %v933_v38  ;;  %v1127_v38 = vsub.f32 %v3170_v47, %v3316_v43 }
 0x307   : > { %1412 = vrot.lane.b32.xlu1 %v3051_v39, %s2757_s18  ;;  %2444 = vpow2.f32 %v1352_v8 }
 0x309   : > { %v3322_v62 = vpop.xlane.xlu2 %1544  ;;  %v2437_v42 = vpop.eup %2436 }
 0x30a   : > { %v947_v60 = vmul.f32 %v2437_v42, %v3226_v34  ;;  %v1542_v12 = vpop.xlane.xlu0 %1541  ;;  %v3331_v10 = vpop.eup %2438  ;;  %v1565_v47 = vsub.f32 %v3195_v1, %v3322_v62 }
 0x30b   : > { %v1564_v29 = vsub.f32 %v3182_v54, %v1542_v12  ;;  %v1162_v23 = vsel %vm861_vm1, %v3331_v10, 0.0  ;;  %v2441_v34 = vpop.eup %2440  ;;  %v1344_v54 = vsub.f32 %v3153_v35, %v3282_v36  ;;  %v3358_v48 = vpop.xlane.xlu1 %1547 }
 0x30c   : > { %v952_v2 = vpack.c.bf16 %v947_v60, %v946_v3  ;;  %v2443_v32 = vpop.eup %2442  ;;  %v948_v22 = vmul.f32 %v2441_v34, %v3222_v31 }
 0x30d   : > { %v1572_v5 = vmul.f32 1.442695, %v1564_v29  ;;  %v949_v50 = vmul.f32 %v2443_v32, %v3224_v33  ;;  %v1354_v14 = vmul.f32 1.442695, %v1344_v54  ;;  %v1142_v29 = vmul.f32 1.442695, %v1127_v38 }
 0x30e   : > { %1634 = vrot.lane.b32.xlu2 %v3051_v39, %s2758_s27  ;;  %2197 = vmatmul.msk.bf16.gmra.mxu0 %vm861_vm1, %v952_v2  ;;  %v3338_v39 = vpop.eup %2444  ;;  %v1574_v32 = vmul.f32 1.442695, %v1565_v47 }
 0x30f   : > { %2446 = vpow2.f32 %v1572_v5  ;;  %v1369_v24 = vsel %vm861_vm1, %v3338_v39, 0.0  ;;  %v953_v25 = vpack.c.bf16 %v949_v50, %v948_v22 }
 0x310   : > { %2448 = vpow2.f32 %v1354_v14 }
 0x311   : > { %v1554_v20 = vpop.xlane.xlu2 %1553 }
 0x312   : > { %v1551_v31 = vpop.xlane.xlu0 %1550  ;;  %v1568_v52 = vsub.f32 %v3232_v40, %v1554_v20 }
 0x313   : > { %v1567_v35 = vsub.f32 %v3218_v16, %v1551_v31  ;;  %v1557_v61 = vpop.xlane.xlu1 %1556 }
 0x314   : > { %1163 = vadd.xlane.f32.xlu0 %v1162_v23  ;;  %v1580_v42 = vmul.f32 1.442695, %v1568_v52  ;;  %v1569_v40 = vsub.f32 %v3240_v46, %v1557_v61  ;;  %v1346_v46 = vsub.f32 %v3176_v51, %v3308_v21 }
 0x315   : > { %v3353_v33 = vpop.eup %2446  ;;  %v1578_v49 = vmul.f32 1.442695, %v1567_v35 }
 0x316   : > { %1414 = vrot.lane.b32.xlu2 %v3021_v56, %s2757_s18  ;;  %v1345_v56 = vsub.f32 %v3164_v44, %v3284_v41  ;;  %v1588_v45 = vsel %vm861_vm1, %v3353_v33, 0.0  ;;  %v1349_v44 = vsub.f32 %v3212_v4, %v3313_v17  ;;  %v3362_v41 = vpop.eup %2448  ;;  %v1582_v2 = vmul.f32 1.442695, %v1569_v40 }
 0x317   : > { %v1372_v59 = vsel %vm861_vm1, %v3362_v41, 0.0  ;;  %v1358_v43 = vmul.f32 1.442695, %v1346_v46 }
 0x318   : > { %v1356_v36 = vmul.f32 1.442695, %v1345_v56  ;;  %v1364_v55 = vmul.f32 1.442695, %v1349_v44 }
 0x31a   : > { %2450 = vpow2.f32 %v1356_v36  ;;  %v1560_v23 = vpop.xlane.xlu0 %1559 }
 0x31b   : > { %v3344_v18 = vpop.xlane.xlu2 %1562  ;;  %2452 = vpow2.f32 %v1578_v49  ;;  %v1570_v5 = vsub.f32 %v3248_v53, %v1560_v23  ;;  %v1348_v53 = vsub.f32 %v3199_v11, %v3304_v27 }
 0x31c   : > { %1370 = vadd.xlane.f32.xlu0 %v1369_v24  ;;  %2454 = vpow2.f32 %v1364_v55 }
 0x31d   : > { %2456 = vpow2.f32 %v1580_v42  ;;  %v1584_v21 = vmul.f32 1.442695, %v1570_v5  ;;  %v1362_v14 = vmul.f32 1.442695, %v1348_v53 }
 0x31e   : > { %1632 = vrot.lane.b32.xlu2 %v3030_v0, %s2758_s27  ;;  %2198 = vmatmul.msk.bf16.gmra.mxu0 %vm861_vm1, %v953_v25  ;;  %2458 = vpow2.f32 %v1582_v2 }
 0x31f   : > { %2460 = vpow2.f32 %v1142_v29 }
 0x320   : > { %v3367_v57 = vpop.eup %2450  ;;  %2462 = vpow2.f32 %v1358_v43 }
 0x321   : > { %v3369_v3 = vpop.eup %2452  ;;  %v1375_v4 = vsel %vm861_vm1, %v3367_v57, 0.0  ;;  %2464 = vpow2.f32 %v1574_v32 }
 0x322   : > { %v1597_v17 = vsel %vm861_vm1, %v3369_v3, 0.0  ;;  %v3376_v60 = vpop.eup %2454 }
 0x323   : > { %v1146_v37 = vpop.xlane.xlu2 %1145  ;;  %v3380_v8 = vpop.eup %2456  ;;  %v1387_v12 = vsel %vm861_vm1, %v3376_v60, 0.0 }
 0x324   : > { %1589 = vadd.xlane.f32.xlu0 %v1588_v45  ;;  %v1600_v20 = vsel %vm861_vm1, %v3380_v8, 0.0  ;;  %v3390_v34 = vpop.eup %2458  ;;  %2466 = vrcp.f32 %v1146_v37 }
 0x325   : > { %v3393_v22 = vpop.eup %2460  ;;  %v1603_v51 = vsel %vm861_vm1, %v3390_v34, 0.0  ;;  %2468 = vpow2.f32 %v1584_v21 }
 0x326   : > { %v1165_v50 = vsel %vm861_vm1, %v3393_v22, 0.0  ;;  %v3401_v62 = vpop.eup %2462 }
 0x327   : > { %v3405_v24 = vpop.eup %2464  ;;  %v1378_v25 = vsel %vm861_vm1, %v3401_v62, 0.0 }
 0x328   : > { %v1591_v56 = vsel %vm861_vm1, %v3405_v24, 0.0 }
 0x32a   : > { %v2467_v31 = vpop.eup %2466 }
 0x32b   : > { %v1417_v16 = vpop.permute.xlu2 %1416  ;;  %v3411_v35 = vpop.eup %2468  ;;  %v1176_v11 = vmul.f32 %v2467_v31, %v3259_v6 }
 0x32c   : > { %1438 = vmatpush.bf16.msra.mxu0 %v1417_v16  ;;  %1373 = vadd.xlane.f32.xlu0 %v1372_v59  ;;  %v1606_v45 = vsel %vm861_vm1, %v3411_v35, 0.0 }
 0x331   : > { %1376 = vadd.xlane.f32.xlu1 %v1375_v4 }
 0x334   : > { %1598 = vadd.xlane.f32.xlu0 %v1597_v17 }
 0x339   : > { %1388 = vadd.xlane.f32.xlu1 %v1387_v12 }
 0x33c   : > { %1601 = vadd.xlane.f32.xlu0 %v1600_v20 }
 0x341   : > { %v3399_v1 = vpop.xlane.xlu1 %1367 }
 0x344   : > { %1604 = vadd.xlane.f32.xlu0 %v1603_v51 }
 0x347   : > { %1166 = vadd.xlane.f32.xlu2 %v1165_v50 }
 0x349   : > { %v1149_v54 = vpop.xlane.xlu0 %1148  ;;  %v1152_v37 = vpop.xlane.xlu1 %1151 }
 0x34a   : > { %2470 = vrcp.f32 %v1149_v54 }
 0x34b   : > { %2472 = vpow2.f32 %v1362_v14 }
 0x34c   : > { %1379 = vadd.xlane.f32.xlu0 %v1378_v25  ;;  %2474 = vrcp.f32 %v1152_v37  ;;  %v1571_v37 = vsub.f32 %v3253_v63, %v3344_v18 }
 0x34f   : > { %1592 = vadd.xlane.f32.xlu2 %v1591_v56  ;;  %v1347_v56 = vsub.f32 %v3187_v58, %v3295_v13 }
 0x350   : > { %v2471_v36 = vpop.eup %2470 }
 0x351   : > { %v1177_v27 = vmul.f32 %v2471_v36, %v3276_v30  ;;  %v3418_v44 = vpop.eup %2472  ;;  %v1360_v36 = vmul.f32 1.442695, %v1347_v56 }
 0x352   : > { %v1384_v55 = vsel %vm861_vm1, %v3418_v44, 0.0  ;;  %v2475_v6 = vpop.eup %2474 }
 0x353   : > { %v1184_v49 = vpack.c.bf16 %v1177_v27, %v1176_v11  ;;  %v1178_v59 = vmul.f32 %v2475_v6, %v3274_v26  ;;  %v1586_v27 = vmul.f32 1.442695, %v1571_v37 }
 0x354   : > { %1607 = vadd.xlane.f32.xlu0 %v1606_v45 }
 0x355   : > { %2203 = vmatmul.msk.bf16.vlgmr.msrb.gmra.mxu2 %vm861_vm1, %v1184_v49 }
 0x359   : > { %v1155_v52 = vpop.xlane.xlu1 %1154 }
 0x35a   : > { %2476 = vrcp.f32 %v1155_v52 }
 0x35c   : > { %1385 = vadd.xlane.f32.xlu0 %v1384_v55  ;;  %v1637_v16 = vpop.permute.xlu0 %1636 }
 0x35d   : > { %1661 = vmatpush.bf16.msra.mxu2 %v1637_v16 }
 0x360   : > { %v2477_v30 = vpop.eup %2476 }
 0x361   : > { %v1179_v42 = vmul.f32 %v2477_v30, %v3288_v28  ;;  %v1161_v4 = vpop.xlane.xlu1 %1160 }
 0x362   : > { %2478 = vrcp.f32 %v1161_v4 }
 0x363   : > { %v1185_v61 = vpack.c.bf16 %v1179_v42, %v1178_v59 }
 0x365   : > { %2204 = vmatmul.msk.bf16.gmra.mxu2 %vm861_vm1, %v1185_v61 }
 0x367   : > { %1410 = vrot.lane.b32.xlu2 %v3030_v0, %s2757_s18 }
 0x368   : > { %v2479_v38 = vpop.eup %2478 }
 0x369   : > { %v1158_v40 = vpop.xlane.xlu2 %1157  ;;  %v1181_v26 = vmul.f32 %v2479_v38, %v3299_v15  ;;  %v1566_v15 = vsub.f32 %v3208_v19, %v3358_v48 }
 0x36a   : > { %2480 = vrcp.f32 %v1158_v40  ;;  %v999_v17 = vpop.f32.mrf.mxu0 }
 0x36b   : > { %v1019_v12 = vpack.c.bf16 %v999_v17, %v999_v17  ;;  %v1576_v50 = vmul.f32 1.442695, %v1566_v15 }
 0x36d   : > { %v3429_v43 = vunpack.c.l.b16 %v1019_v12  ;;  %2482 = vpow2.f32 %v1576_v50 }
 0x36e   : > { %2484 = vpow2.f32 %v1360_v36 }
 0x36f   : > { %2486 = vpow2.f32 %v1586_v27 }
 0x370   : > { %v2481_v2 = vpop.eup %2480 }
 0x371   : > { %v1635_v29 = vpop.permute.xlu2 %1634  ;;  %v1180_v46 = vmul.f32 %v2481_v2, %v3306_v7 }
 0x372   : > { %v1001_v28 = vpop.f32.mrf.mxu0  ;;  %1662 = vmatpush.bf16.msra.mxu2 %v1635_v29 }
 0x373   : > { %v1020_v20 = vpack.c.bf16 %v1001_v28, %v1001_v28  ;;  %v1186_v47 = vpack.c.bf16 %v1181_v26, %v1180_v46  ;;  %v3446_v19 = vpop.eup %2482 }
 0x374   : > { %v1594_v11 = vsel %vm861_vm1, %v3446_v19, 0.0  ;;  %v3452_v49 = vpop.eup %2484 }
 0x375   : > { %v3431_v23 = vunpack.c.l.b16 %v1020_v20  ;;  %2205 = vmatmul.msk.bf16.gmra.mxu2 %vm861_vm1, %v1186_v47  ;;  %v1381_v16 = vsel %vm861_vm1, %v3452_v49, 0.0  ;;  %v3462_v18 = vpop.eup %2486 }
 0x376   : > { %v1609_v6 = vsel %vm861_vm1, %v3462_v18, 0.0 }
 0x377   : > { %v1709_v0 = vpack.c.b16 %v3431_v23, %v3429_v43 }
 0x379   : > { %v1415_v32 = vpop.permute.xlu2 %1414  ;;  %v1413_v51 = vpop.permute.xlu1 %1412 }
 0x37a   : > { %v1004_v5 = vpop.f32.mrf.mxu0  ;;  %1439 = vmatpush.bf16.msra.mxu0 %v1415_v32 }
 0x37b   : > { %v1021_v7 = vpack.c.bf16 %v1004_v5, %v1004_v5 }
 0x37d   : > { %v3438_v25 = vunpack.c.l.b16 %v1021_v7 }
 0x37e   : > { %1440 = vmatpush.bf16.msra.mxu0 %v1413_v51 }
 0x381   : > { %v1633_v21 = vpop.permute.xlu2 %1632 }
 0x382   : > { %v1006_v54 = vpop.f32.mrf.mxu0  ;;  %1663 = vmatpush.bf16.msra.mxu2 %v1633_v21 }
 0x383   : > { %v1022_v53 = vpack.c.bf16 %v1006_v54, %v1006_v54 }
 0x385   : > { %v3440_v14 = vunpack.c.l.b16 %v1022_v53 }
 0x387   : > { %v1710_v31 = vpack.c.b16 %v3440_v14, %v3438_v25  ;;  %v1164_v30 = vpop.xlane.xlu0 %1163 }
 0x388   : > { %2488 = vrcp.f32 %v1164_v30 }
 0x38b   : > { %v1009_v48 = vpop.f32.mrf.mxu0 }
 0x38c   : > { %v1023_v45 = vpack.c.bf16 %v1009_v48, %v1009_v48 }
 0x38e   : > { %v3454_v52 = vunpack.c.l.b16 %v1023_v45  ;;  %v2489_v61 = vpop.eup %2488 }
 0x38f   : > { %v1371_v59 = vpop.xlane.xlu0 %1370  ;;  %v1182_v17 = vmul.f32 %v2489_v61, %v3331_v10 }
 0x390   : > { %1595 = vadd.xlane.f32.xlu2 %v1594_v11 }
 0x393   : > { %v1011_v58 = vpop.f32.mrf.mxu0 }
 0x394   : > { %v1024_v13 = vpack.c.bf16 %v1011_v58, %v1011_v58 }
 0x396   : > { %v3456_v55 = vunpack.c.l.b16 %v1024_v13 }
 0x397   : > { %v1590_v2 = vpop.xlane.xlu0 %1589 }
 0x398   : > { %1382 = vadd.xlane.f32.xlu2 %v1381_v16  ;;  %v1711_v63 = vpack.c.b16 %v3456_v55, %v3454_v52 }
 0x39f   : > { %v1374_v10 = vpop.xlane.xlu0 %1373 }
 0x3a0   : > { %1610 = vadd.xlane.f32.xlu2 %v1609_v6 }
 0x3a4   : > { %v1377_v47 = vpop.xlane.xlu1 %1376 }
 0x3ba   : > { %v1167_v42 = vpop.xlane.xlu2 %1166 }
 0x3bb   : > { %2490 = vrcp.f32 %v1167_v42 }
 0x3bc   : > { %2492 = vrcp.f32 %v1371_v59 }
 0x3bd   : > { %2494 = vrcp.f32 %v3399_v1 }
 0x3c1   : > { %v2491_v4 = vpop.eup %2490 }
 0x3c2   : > { %v1593_v40 = vpop.xlane.xlu2 %1592  ;;  %v1183_v38 = vmul.f32 %v2491_v4, %v3393_v22  ;;  %v2493_v29 = vpop.eup %2492 }
 0x3c3   : > { %v2495_v46 = vpop.eup %2494  ;;  %2496 = vrcp.f32 %v1593_v40  ;;  %v1399_v26 = vmul.f32 %v2493_v29, %v3338_v39 }
 0x3c4   : > { %v1187_v12 = vpack.c.bf16 %v1183_v38, %v1182_v17  ;;  %2498 = vrcp.f32 %v1590_v2  ;;  %v1398_v28 = vmul.f32 %v2495_v46, %v3268_v9 }
 0x3c5   : > { %2500 = vrcp.f32 %v1377_v47 }
 0x3c6   : > { %2206 = vmatmul.msk.bf16.gmra.mxu2 %vm861_vm1, %v1187_v12  ;;  %v1406_v1 = vpack.c.bf16 %v1399_v26, %v1398_v28  ;;  %2502 = vrcp.f32 %v1374_v10  ;;  %v1389_v12 = vpop.xlane.xlu1 %1388 }
 0x3c9   : > { %v2497_v32 = vpop.eup %2496 }
 0x3ca   : > { %v1411_v20 = vpop.permute.xlu2 %1410  ;;  %v2499_v22 = vpop.eup %2498  ;;  %v1621_v5 = vmul.f32 %v2497_v32, %v3405_v24 }
 0x3cb   : > { %1441 = vmatpush.bf16.msra.mxu0 %v1411_v20  ;;  %v1620_v51 = vmul.f32 %v2499_v22, %v3353_v33  ;;  %v2501_v39 = vpop.eup %2500  ;;  %v1599_v24 = vpop.xlane.xlu0 %1598 }
 0x3cc   : > { %v2503_v9 = vpop.eup %2502  ;;  %v1401_v7 = vmul.f32 %v2501_v39, %v3367_v57  ;;  %2504 = vrcp.f32 %v1599_v24 }
 0x3cd   : > { %v1628_v15 = vpack.c.bf16 %v1621_v5, %v1620_v51  ;;  %v1400_v50 = vmul.f32 %v2503_v9, %v3362_v41 }
 0x3ce   : > { %2211 = vmatmul.msk.bf16.vlgmr.msra.gmra.mxu0 %vm861_vm1, %v1406_v1 }
 0x3cf   : > { %v1407_v54 = vpack.c.bf16 %v1401_v7, %v1400_v50 }
 0x3d2   : > { %v2505_v58 = vpop.eup %2504 }
 0x3d3   : > { %v1602_v11 = vpop.xlane.xlu0 %1601  ;;  %v1623_v30 = vmul.f32 %v2505_v58, %v3369_v3 }
 0x3d6   : > { %2219 = vmatmul.msk.bf16.vlgmr.msra.gmra.mxu2 %vm861_vm1, %v1628_v15  ;;  %v3495_v15 = vpop.f32.mrf.mxu0 }
 0x3d8   : > { %v1221_v21 = vpop.f32.mrf.mxu2 }
 0x3d9   : > { %v1241_v53 = vpack.c.bf16 %v1221_v21, %v1221_v21 }
 0x3db   : > { %v1721_v48 = vunpack.c.l.b16 %v1241_v53  ;;  %v1605_v27 = vpop.xlane.xlu0 %1604 }
 0x3de   : > { %2212 = vmatmul.msk.bf16.gmra.mxu0 %vm861_vm1, %v1407_v54  ;;  %v3497_v39 = vpop.f32.mrf.mxu0 }
 0x3e0   : > { %v1223_v56 = vpop.f32.mrf.mxu2 }
 0x3e1   : > { %v1242_v36 = vpack.c.bf16 %v1223_v56, %v1223_v56 }
 0x3e3   : > { %v1722_v37 = vunpack.c.l.b16 %v1242_v36  ;;  %v1380_v45 = vpop.xlane.xlu0 %1379 }
 0x3e5   : > { %v1729_v33 = vpack.c.b16 %v1722_v37, %v1721_v48 }
 0x3e7   : > { %1733 = vrot.lane.b32.xlu2 %v1729_v33, %s2758_s27 }
 0x3e8   : > { %v1226_v20 = vpop.f32.mrf.mxu2 }
 0x3e9   : > { %v1243_v24 = vpack.c.bf16 %v1226_v20, %v1226_v20 }
 0x3eb   : > { %v1608_v13 = vpop.xlane.xlu0 %1607  ;;  %v1723_v33 = vunpack.c.l.b16 %v1243_v24 }
 0x3f0   : > { %v1228_v22 = vpop.f32.mrf.mxu2 }
 0x3f1   : > { %v1244_v56 = vpack.c.bf16 %v1228_v22, %v1228_v22 }
 0x3f3   : > { %v1386_v17 = vpop.xlane.xlu0 %1385  ;;  %v1724_v37 = vunpack.c.l.b16 %v1244_v56 }
 0x3f8   : > { %v1231_v51 = vpop.f32.mrf.mxu2 }
 0x403   : > { %v1596_v57 = vpop.xlane.xlu2 %1595 }
 0x404   : > { %2506 = vrcp.f32 %v1596_v57 }
 0x405   : > { %2508 = vrcp.f32 %v1380_v45 }
 0x40a   : > { %v2507_v41 = vpop.eup %2506 }
 0x40b   : > { %v1383_v16 = vpop.xlane.xlu2 %1382  ;;  %v1622_v6 = vmul.f32 %v2507_v41, %v3446_v19  ;;  %v2509_v42 = vpop.eup %2508 }
 0x40c   : > { %2510 = vrcp.f32 %v1383_v16  ;;  %v1402_v4 = vmul.f32 %v2509_v42, %v3401_v62 }
 0x40d   : > { %v1629_v59 = vpack.c.bf16 %v1623_v30, %v1622_v6  ;;  %2512 = vrcp.f32 %v1605_v27 }
 0x40e   : > { %2514 = vrcp.f32 %v1602_v11  ;;  %v1730_v11 = vpack.c.b16 %v1724_v37, %v1723_v33  ;;  %v2292_v37 = vld [vmem:[#allocation10 + $0x18] sm:$0xff] }
 0x40f   : > { %2220 = vmatmul.msk.bf16.gmra.mxu2 %vm861_vm1, %v1629_v59  ;;  %2516 = vrcp.f32 %v1386_v17 }
 0x410   : > { %2518 = vrcp.f32 %v1389_v12 }
 0x412   : > { %v2511_v61 = vpop.eup %2510 }
 0x413   : > { %v1403_v40 = vmul.f32 %v2511_v61, %v3452_v49  ;;  %v2513_v2 = vpop.eup %2512  ;;  %v1611_v46 = vpop.xlane.xlu2 %1610 }
 0x414   : > { %v2515_v19 = vpop.eup %2514  ;;  %v1625_v3 = vmul.f32 %v2513_v2, %v3390_v34  ;;  %2520 = vrcp.f32 %v1611_v46 }
 0x415   : > { %v1408_v38 = vpack.c.bf16 %v1403_v40, %v1402_v4  ;;  %v1624_v29 = vmul.f32 %v2515_v19, %v3380_v8  ;;  %v2517_v28 = vpop.eup %2516  ;;  %2522 = vrcp.f32 %v1608_v13  ;;  %v1245_v40 = vpack.c.bf16 %v1231_v51, %v1231_v51 }
 0x416   : > { %v2519_v62 = vpop.eup %2518  ;;  %v1404_v49 = vmul.f32 %v2517_v28, %v3418_v44  ;;  %v1233_v44 = vpop.f32.mrf.mxu2 }
 0x417   : > { %2213 = vmatmul.msk.bf16.gmra.mxu0 %vm861_vm1, %v1408_v38  ;;  %v1630_v26 = vpack.c.bf16 %v1625_v3, %v1624_v29  ;;  %v1405_v1 = vmul.f32 %v2519_v62, %v3376_v60  ;;  %v1246_v61 = vpack.c.bf16 %v1233_v44, %v1233_v44  ;;  %v1725_v38 = vunpack.c.l.b16 %v1245_v40  ;;  %v2295_v44 = vld [vmem:[#allocation10 + $0x30] sm:$0xff] }
 0x419   : > { %v1409_v47 = vpack.c.bf16 %v1405_v1, %v1404_v49  ;;  %v1726_v17 = vunpack.c.l.b16 %v1246_v61 }
 0x41a   : > { %v2521_v32 = vpop.eup %2520 }
 0x41b   : > { %v2523_v34 = vpop.eup %2522  ;;  %v1627_v8 = vmul.f32 %v2521_v32, %v3462_v18  ;;  %v1731_v2 = vpack.c.b16 %v1726_v17, %v1725_v38 }
 0x41c   : > { %v1626_v10 = vmul.f32 %v2523_v34, %v3411_v35 }
 0x41e   : > { %v1631_v5 = vpack.c.bf16 %v1627_v8, %v1626_v10  ;;  %v2296_v10 = vld [vmem:[#allocation10 + $0x38] sm:$0xff] }
 0x41f   : > { %2221 = vmatmul.msk.bf16.gmra.mxu2 %vm861_vm1, %v1630_v26  ;;  %1898 = vmatpush.bf16.msra.mxu3 %v2296_v10 }
 0x423   : > { %1899 = vmatpush.bf16.msra.mxu3 %v2295_v44 }
 0x427   : > { %2214 = vmatmul.msk.bf16.gmra.mxu0 %vm861_vm1, %v1409_v47 }
 0x42f   : > { %2222 = vmatmul.msk.bf16.gmra.mxu2 %vm861_vm1, %v1631_v5 }
 0x449   : > { %v1236_v60 = vpop.f32.mrf.mxu2 }
 0x44a   : > { %v1247_v19 = vpack.c.bf16 %v1236_v60, %v1236_v60 }
 0x44b   : > { %v1443_v9 = vpop.f32.mrf.mxu0 }
 0x44c   : > { %v1463_v21 = vpack.c.bf16 %v1443_v9, %v1443_v9  ;;  %v1727_v29 = vunpack.c.l.b16 %v1247_v19 }
 0x44e   : > { %v1749_v53 = vunpack.c.l.b16 %v1463_v21  ;;  %v2294_v21 = vld [vmem:[#allocation10 + $0x28] sm:$0xff] }
 0x44f   : > { %1900 = vmatpush.bf16.msra.mxu3 %v2294_v21 }
 0x451   : > { %v1238_v7 = vpop.f32.mrf.mxu2 }
 0x452   : > { %v1248_v12 = vpack.c.bf16 %v1238_v7, %v1238_v7 }
 0x453   : > { %v1445_v50 = vpop.f32.mrf.mxu0 }
 0x454   : > { %v1464_v54 = vpack.c.bf16 %v1445_v50, %v1445_v50  ;;  %v1728_v3 = vunpack.c.l.b16 %v1248_v12  ;;  %v2293_v50 = vld [vmem:[#allocation10 + $0x20] sm:$0xff] }
 0x455   : > { %1901 = vmatpush.bf16.msra.mxu3 %v2293_v50 }
 0x456   : > { %v1750_v18 = vunpack.c.l.b16 %v1464_v54  ;;  %v1732_v46 = vpack.c.b16 %v1728_v3, %v1727_v29 }
 0x458   : > { %v1757_v35 = vpack.c.b16 %v1750_v18, %v1749_v53 }
 0x459   : > { %v1665_v36 = vpop.f32.mrf.mxu2  ;;  %1902 = vmatpush.bf16.msra.mxu3 %v2292_v37 }
 0x45a   : > { %1761 = vrot.lane.b32.xlu0 %v1757_v35, %s2757_s18  ;;  %v1685_v27 = vpack.c.bf16 %v1665_v36, %v1665_v36 }
 0x45b   : > { %v1448_v48 = vpop.f32.mrf.mxu0 }
 0x45c   : > { %v1465_v57 = vpack.c.bf16 %v1448_v48, %v1448_v48  ;;  %v1777_v13 = vunpack.c.l.b16 %v1685_v27 }
 0x45e   : > { %v1751_v30 = vunpack.c.l.b16 %v1465_v57 }
 0x461   : > { %v1667_v45 = vpop.f32.mrf.mxu2 }
 0x462   : > { %v1686_v58 = vpack.c.bf16 %v1667_v45, %v1667_v45  ;;  %1735 = vrot.lane.b32.xlu0 %v1730_v11, %s2758_s27  ;;  %v2291_v45 = vld [vmem:[#allocation10 + $0x10] sm:$0xff] }
 0x463   : > { %v1450_v41 = vpop.f32.mrf.mxu0  ;;  %1903 = vmatpush.bf16.msra.mxu3 %v2291_v45 }
 0x464   : > { %v1778_v16 = vunpack.c.l.b16 %v1686_v58  ;;  %v1466_v6 = vpack.c.bf16 %v1450_v41, %v1450_v41  ;;  %v2290_v41 = vld [vmem:[#allocation10 + $0x8] sm:$0xff] }
 0x466   : > { %v1785_v59 = vpack.c.b16 %v1778_v16, %v1777_v13  ;;  %v1752_v42 = vunpack.c.l.b16 %v1466_v6  ;;  %v2289_v13 = vld [vmem:[#allocation10] sm:$0xff] }
 0x467   : > { %1904 = vmatpush.bf16.msra.mxu3 %v2290_v41 }
 0x468   : > { %v1758_v4 = vpack.c.b16 %v1752_v42, %v1751_v30  ;;  %1789 = vrot.lane.b32.xlu1 %v1785_v59, %s2756_s20 }
 0x46a   : > { %1763 = vrot.lane.b32.xlu2 %v1758_v4, %s2757_s18  ;;  %v1734_v4 = vpop.permute.xlu2 %1733 }
 0x46b   : > { %1905 = vmatpush.bf16.msra.mxu3 %v2289_v13  ;;  %v1799_v17 = vsel %vm807_vm0, %v1709_v0, %v1734_v4 }
 0x472   : > { %1737 = vrot.lane.b32.xlu2 %v1731_v2, %s2758_s27 }
 0x47a   : > { %1739 = vrot.lane.b32.xlu2 %v1732_v46, %s2758_s27 }
 0x492   : > { %v1670_v26 = vpop.f32.mrf.mxu2 }
 0x493   : > { %v1687_v62 = vpack.c.bf16 %v1670_v26, %v1670_v26 }
 0x494   : > { %v1453_v28 = vpop.f32.mrf.mxu0 }
 0x495   : > { %v1467_v20 = vpack.c.bf16 %v1453_v28, %v1453_v28  ;;  %v1779_v32 = vunpack.c.l.b16 %v1687_v62 }
 0x497   : > { %v1753_v22 = vunpack.c.l.b16 %v1467_v20 }
 0x49a   : > { %v1672_v49 = vpop.f32.mrf.mxu2 }
 0x49b   : > { %v1688_v1 = vpack.c.bf16 %v1672_v49, %v1672_v49  ;;  %v1025_v49 = vpack.c.bf16 %v3495_v15, %v3495_v15 }
 0x49c   : > { %v1455_v47 = vpop.f32.mrf.mxu0 }
 0x49d   : > { %v1780_v34 = vunpack.c.l.b16 %v1688_v1  ;;  %v1468_v8 = vpack.c.bf16 %v1455_v47, %v1455_v47  ;;  %v1707_v1 = vunpack.c.l.b16 %v1025_v49 }
 0x49f   : > { %v1786_v5 = vpack.c.b16 %v1780_v34, %v1779_v32  ;;  %v1754_v51 = vunpack.c.l.b16 %v1468_v8 }
 0x4a1   : > { %v1759_v60 = vpack.c.b16 %v1754_v51, %v1753_v22  ;;  %1791 = vrot.lane.b32.xlu0 %v1786_v5, %s2756_s20 }
 0x4a2   : > { %v1675_v9 = vpop.f32.mrf.mxu2 }
 0x4a3   : > { %1765 = vrot.lane.b32.xlu1 %v1759_v60, %s2757_s18  ;;  %v1689_v54 = vpack.c.bf16 %v1675_v9, %v1675_v9 }
 0x4a4   : > { %v1458_v7 = vpop.f32.mrf.mxu0 }
 0x4a5   : > { %v1469_v18 = vpack.c.bf16 %v1458_v7, %v1458_v7  ;;  %v1781_v36 = vunpack.c.l.b16 %v1689_v54 }
 0x4a7   : > { %v1755_v33 = vunpack.c.l.b16 %v1469_v18 }
 0x4aa   : > { %v1677_v53 = vpop.f32.mrf.mxu2 }
 0x4ab   : > { %v1690_v56 = vpack.c.bf16 %v1677_v53, %v1677_v53 }
 0x4ac   : > { %v1460_v35 = vpop.f32.mrf.mxu0 }
 0x4ad   : > { %v1782_v24 = vunpack.c.l.b16 %v1690_v56  ;;  %v1470_v48 = vpack.c.bf16 %v1460_v35, %v1460_v35 }
 0x4af   : > { %v1787_v11 = vpack.c.b16 %v1782_v24, %v1781_v36  ;;  %v1756_v27 = vunpack.c.l.b16 %v1470_v48 }
 0x4b1   : > { %v1760_v57 = vpack.c.b16 %v1756_v27, %v1755_v33  ;;  %1793 = vrot.lane.b32.xlu0 %v1787_v11, %s2756_s20 }
 0x4b2   : > { %v1680_v58 = vpop.f32.mrf.mxu2 }
 0x4b3   : > { %1767 = vrot.lane.b32.xlu1 %v1760_v57, %s2757_s18  ;;  %v1691_v16 = vpack.c.bf16 %v1680_v58, %v1680_v58  ;;  %s1936_s18 = scalar_lea.sflag [#allocation4], %s2940_s24 }
 0x4b5   : > { %v1783_v59 = vunpack.c.l.b16 %v1691_v16 }
 0x4ba   : > { %v1682_v6 = vpop.f32.mrf.mxu2 }
 0x4bb   : > { %v1692_v30 = vpack.c.bf16 %v1682_v6, %v1682_v6 }
 0x4bd   : > { %v1784_v42 = vunpack.c.l.b16 %v1692_v30 }
 0x4bf   : > { %v1788_v61 = vpack.c.b16 %v1784_v42, %v1783_v59 }
 0x4c1   : > { %1795 = vrot.lane.b32.xlu0 %v1788_v61, %s2756_s20  ;;  %s1947_s20 = scalar_lea.hbm %s3581_s9, %s2297_s25 }
 0x4c2   : > { %s1950_s19 = sshll.u32 %s1947_s20, 4  ;;  %s1951_s19 = int_to_ptr.hbm [resolvable:$true] %s1950_s19 }
 0x4c3   : > { %s2688_s27 = sshra.s32 %s1951_s19, 4  ;;  %s2689_s27 = int_to_ptr.hbm [resolvable:$true] %s2688_s27 }
 0x4c4   : > { %v1764_v29 = vpop.permute.xlu2 %1763  ;;  %s2690_s29 = scalar_lea.hbm %s2689_s27, 64  ;;  %p2695_p11 = scmp.lt.s32.totalorder %s2689_s27, %s3581_s9 }
 0x4c5   : > { %p2691_p1 = scmp.ne.s32.totalorder %s2689_s27, %s2690_s29  ;;  %p2696_p2 = scmp.lt.s32.totalorder %s2694_s23, %s2690_s29 }
 0x4c7   : > { %p2692_p4 = pnand %p2691_p1, %p2907_p3  ;;  %p2697_p9 = por %p2696_p2, %p2695_p11 }
 0x4c9   : > { %p2693_p8 = pneg %p2692_p4 }
 0x4cb   : > { %p2698_p10 = pnand %p2697_p9, %p2693_p8 }
 0x4cc   : > { %v1762_v40 = vpop.permute.xlu0 %1761  ;;  %v1738_v23 = vpop.permute.xlu2 %1737 }
 0x4cd   : > { %v1810_v38 = vsel %vm861_vm1, %v1799_v17, %v1762_v40  ;;  %v1805_v28 = vsel %vm807_vm0, %v1711_v63, %v1738_v23 }
 0x4d4   : > { %v1736_v19 = vpop.permute.xlu0 %1735  ;;  %v1740_v47 = vpop.permute.xlu2 %1739 }
 0x4d5   : > { %v1802_v3 = vsel %vm807_vm0, %v1710_v31, %v1736_v19  ;;  %v1026_v31 = vpack.c.bf16 %v3497_v39, %v3497_v39  ;;  %v2395_v39 = vld [vmem:[%s3580_s8] ss:$0 sm:$0xff] }
 0x4d6   : > { %v1812_v26 = vsel %vm861_vm1, %v1802_v3, %v1764_v29 }
 0x4d7   : > { %v1708_v20 = vunpack.c.l.b16 %v1026_v31 }
 0x4d9   : > { %v1712_v32 = vpack.c.b16 %v1708_v20, %v1707_v1 }
 0x4da   : > { %v1790_v2 = vpop.permute.xlu1 %1789 }
 0x4db   : > { %v1819_v12 = vsel %vm1817_vm2, %v1810_v38, %v1790_v2  ;;  %v1808_v55 = vsel %vm807_vm0, %v1712_v32, %v1740_v47 }
 0x4dc   : > { %1906 = vmatmul.bf16.vlgmr.msra.gmra.mxu3 %v1819_v12 }
 0x513   : > { %v1792_v46 = vpop.permute.xlu0 %1791 }
 0x514   : > { %v1822_v43 = vsel %vm1817_vm2, %v1812_v26, %v1792_v46 }
 0x515   : > { %1911 = vmatmul.bf16.gmra.mxu3 %v1822_v43  ;;  %v1766_v0 = vpop.permute.xlu1 %1765 }
 0x516   : > { %v1814_v62 = vsel %vm861_vm1, %v1805_v28, %v1766_v0 }
 0x523   : > { %v1794_v25 = vpop.permute.xlu0 %1793 }
 0x524   : > { %v1825_v14 = vsel %vm1817_vm2, %v1814_v62, %v1794_v25 }
 0x525   : > { %1916 = vmatmul.bf16.gmra.mxu3 %v1825_v14  ;;  %v1768_v52 = vpop.permute.xlu1 %1767 }
 0x526   : > { %v1816_v63 = vsel %vm861_vm1, %v1808_v55, %v1768_v52 }
 0x533   : > { %v1796_v34 = vpop.permute.xlu0 %1795 }
 0x534   : > { %v1828_v8 = vsel %vm1817_vm2, %v1816_v63, %v1796_v34 }
 0x535   : > { %1921 = vmatmul.bf16.gmra.mxu3 %v1828_v8 }
 0x55f   : > { %v1907_v10 = vpop.f32.mrf.mxu3 }
 0x560   : > { %v1908_v15 = vadd.f32 %v2395_v39, %v1907_v10 }
 0x562   : > { %1927 = vst [vmem:[%s418_s5] sm:$0xff] %v1908_v15 }
 0x567   : > { %v1909_v22 = vpop.f32.mrf.mxu3 }
 0x568   : > { %v1910_v5 = vadd.f32 %v2395_v39, %v1909_v22 }
 0x56a   : > { %1928 = vst [vmem:[%s418_s5 + $0x8] sm:$0xff] %v1910_v5 }
 0x598   : > { %v1912_v51 = vpop.f32.mrf.mxu3 }
 0x599   : > { %v1913_v44 = vadd.f32 %v2395_v39, %v1912_v51 }
 0x59b   : > { %1929 = vst [vmem:[%s418_s5 + $0x10] sm:$0xff] %v1913_v44 }
 0x5a0   : > { %v1914_v60 = vpop.f32.mrf.mxu3 }
 0x5a1   : > { %v1915_v9 = vadd.f32 %v2395_v39, %v1914_v60 }
 0x5a3   : > { %1930 = vst [vmem:[%s418_s5 + $0x18] sm:$0xff] %v1915_v9 }
 0x5a8   : > { %v1917_v7 = vpop.f32.mrf.mxu3 }
 0x5a9   : > { %v1918_v21 = vadd.f32 %v2395_v39, %v1917_v7 }
 0x5ab   : > { %1931 = vst [vmem:[%s418_s5 + $0x20] sm:$0xff] %v1918_v21 }
 0x5b0   : > { %v1919_v50 = vpop.f32.mrf.mxu3 }
 0x5b1   : > { %v1920_v54 = vadd.f32 %v2395_v39, %v1919_v50 }
 0x5b3   : > { %1932 = vst [vmem:[%s418_s5 + $0x28] sm:$0xff] %v1920_v54 }
 0x5b8   : > { %v1922_v53 = vpop.f32.mrf.mxu3 }
 0x5b9   : > { %v1923_v18 = vadd.f32 %v2395_v39, %v1922_v53 }
 0x5bb   : > { %1933 = vst [vmem:[%s418_s5 + $0x30] sm:$0xff] %v1923_v18 }
 0x5c0   : > { %v1924_v56 = vpop.f32.mrf.mxu3 }
 0x5c1   : > { %v1925_v35 = vadd.f32 %v2395_v39, %v1924_v56 }
 0x5c3   : > { %1934 = vst [vmem:[%s418_s5 + $0x38] sm:$0xff] %v1925_v35 }
 0x5c4   : > { %2701 = shalt.err (!%p2698_p10)
}
 0x5c5   : > { %s2759_s24 = smov 128   ;;  %s2760_s5 = smov 8  }
 0x5c6   : > { %2316 = dma.vmem_to_hbm [thread:$0]  (%p2907_p3), %s1949_s28, 1024, %s1951_s19, %s1936_s18, %s2759_s24, %s2759_s24, %s2760_s5  }
 0x5c7 PF: > { %s1965_s25 = sand.u32 1, %s2736_s30   ;;  %p3598_p12 = scmp.ge.s32.totalorder %s2748_s12, 2 }
 0x5c8   : > { %s1966_s1 = scalar_lea.sflag [#allocation4], %s1965_s25 }
 0x5c9   : > { %p2336_p13 = pnand %p3598_p12, %p2846_p6 }
 0x5cb   : > { %p2337_p0 = pneg %p2336_p13 }
 0x5cd   : > { %2731 = dma.done.wait (%p2337_p0), %s1966_s1, 1024  }
 0x5ce   : > { %2733 = vsyncadd (%p2337_p0), %s1966_s1, 4294966272  ;;  %p24_p5 = scmp.ge.s32.totalorder %s2897_s14, 4   ;;  %s3599_s30 = smov %s2740_s10 }
 0x5cf   : > { %s3600_s10 = smov %s2744_s11  ;;  %s3601_s11 = smov %s2913_s22 }
 0x5d0   : > { %s3602_s12 = smov %s2897_s14  ;;  %26 = sbr.rel (!%p24_p5) target bundleno = 11 (0xb), region = 117 }
 0x5d5   :  { %1972 = vsyncpa [#allocation3], 1 }
 0x5d6   :  { %1974 = vsyncpa [#allocation3 + $0x1], 1 }
 0x5d7   :  { %1975 = vsyncpa [#allocation6], 1 }
 0x5d8   :  { %1976 = vsyncpa [#allocation9], 1 }
 0x5d9   :  { %1977 = vsyncpa [#allocation4], 1 }
 0x5da   :  { %1979 = vsyncpa [#allocation4 + $0x1], 1 }

</bundles_post_ra>
